<compile_context>
chip_gen: v5e
topology: v5e:2x2
jax: 0.10.0
libtpu: 0.0.40
codegen_flags: <defaults>
</compile_context>

<pallas_src>
import functools
import math

import jax
import jax.numpy as jnp
from jax.experimental import pallas as pl
from jax.experimental.pallas import tpu as pltpu

# ---------------- configuration (small, consistent with the module) ----------------
SRC_NTOKEN = 50     # src_ntoken
NHID       = 32     # args.nhid_tran
NHEAD      = 4      # args.nhead
D_K        = NHID // NHEAD
NFF        = 64     # args.nff
NLAYERS    = 2      # args.nlayers_transformer
LN_EPS     = 1e-5
NEG_BIAS   = -1e9   # additive mask value (safer & cheaper than -inf)


# ---------------------------------- kernel ----------------------------------
def _layer_norm(x, w, b):
    mu = jnp.mean(x, axis=-1, keepdims=True)
    var = jnp.mean((x - mu) ** 2, axis=-1, keepdims=True)
    return (x - mu) * jax.lax.rsqrt(var + LN_EPS) * w + b


def encoder_kernel(x_ref, kbias_ref, wqk_ref, bqk_ref, wvo_ref,
                   w1_ref, b1_ref, w2_ref, vecs_ref, out_ref, *, seq_len):
    bt = x_ref.shape[0]                      # B*T (static)
    scale = 1.0 / math.sqrt(D_K)

    h = x_ref[...]                           # tok_emb + pos_enc (added in wrapper); embd dropout = id

    # In-kernel additive attention bias (computed once, VPU-only, no O(BT^2) operand DMA):
    #   same batch block AND valid key -> key bias row value (0) ; otherwise -> -1e9.
    # Block ids via float floor((i+0.5)/T): exact for these small integers, avoids vector
    # integer division.
    inv_t = 1.0 / float(seq_len)
    ri = jax.lax.broadcasted_iota(jnp.int32, (bt, bt), 0).astype(jnp.float32)
    ci = jax.lax.broadcasted_iota(jnp.int32, (bt, bt), 1).astype(jnp.float32)
    row_blk = jnp.floor((ri + 0.5) * inv_t)
    col_blk = jnp.floor((ci + 0.5) * inv_t)
    bias = jnp.where(row_blk == col_blk, kbias_ref[...], NEG_BIAS)        # (BT, BT)

    def vrow(i):                              # packed per-layer D-vectors, (1, D) each
        return vecs_ref[i]

    for l in range(NLAYERS):                  # static unroll over the (tiny) layer stack
        base = 6 * l
        emb = _layer_norm(h, vrow(base + 0), vrow(base + 1))             # ln1

        attn = None
        for hd in range(NHEAD):
            # per-head projections: leading-axis ref indexing, no lane slicing
            qh = jnp.dot(emb, wqk_ref[l, 0, hd],
                         preferred_element_type=jnp.float32) + bqk_ref[l, 0, hd]   # (BT, Dk)
            kh = jnp.dot(emb, wqk_ref[l, 1, hd],
                         preferred_element_type=jnp.float32) + bqk_ref[l, 1, hd]   # (BT, Dk)
            # value pre-projected through the output projection: v'_h = emb @ (Wv_h @ Wo_h)
            vph = jnp.dot(emb, wvo_ref[l, hd],
                          preferred_element_type=jnp.float32)                      # (BT, D)

            s = jax.lax.dot_general(qh, kh, (((1,), (1,)), ((), ())),
                                    preferred_element_type=jnp.float32) * scale + bias
            m = jnp.max(s, axis=-1, keepdims=True)
            p = jnp.exp(s - m)                                           # masked entries underflow to 0
            p = p * pl.reciprocal(jnp.sum(p, axis=-1, keepdims=True), approx=True)
            contrib = jnp.dot(p, vph, preferred_element_type=jnp.float32)          # (BT, D)

            if hd == 0:
                # fold the per-layer attention bias (bv @ Wo + bo) into the first head
                attn = contrib + vrow(base + 2)
            else:
                attn = attn + contrib

        h1 = attn + emb                                                  # dropout1 = id; residual to ln1 out
        n2 = _layer_norm(h1, vrow(base + 3), vrow(base + 4))             # ln2
        ff = jnp.maximum(
            jnp.dot(n2, w1_ref[l], preferred_element_type=jnp.float32) + b1_ref[l], 0.0)
        ff = jnp.dot(ff, w2_ref[l], preferred_element_type=jnp.float32) + vrow(base + 5)
        h = ff + n2                                                      # dropout2 = id; residual to ln2 out

    out_ref[...] = _layer_norm(h, vrow(6 * NLAYERS + 0), vrow(6 * NLAYERS + 1))    # final ln_f


# ---------------------------------- wrapper ----------------------------------
def transformer_encoder(tokens, mask, params):
    B, T = tokens.shape
    D, F, L, H, DK = NHID, NFF, NLAYERS, NHEAD, D_K
    BT = B * T

    # TODO(synk): token-embedding row gather is data-dependent; done in the wrapper (fuses
    # into the gather epilogue together with the positional-encoding add).
    x = (params["emb"][tokens] + params["pe"][None]).astype(jnp.float32).reshape(BT, D)

    # (1, BT) additive key bias row: 0 for valid keys, -1e9 for padded keys.
    kbias = jnp.where(mask.reshape(1, BT) != 0, 0.0, NEG_BIAS).astype(jnp.float32)

    # ---- one-time weight repacking: per-head layouts + Wv·Wo / bias folds ----
    wq_h = params["wq"].reshape(L, D, H, DK).transpose(0, 2, 1, 3)       # (L,H,D,Dk)
    wk_h = params["wk"].reshape(L, D, H, DK).transpose(0, 2, 1, 3)
    wqk = jnp.stack([wq_h, wk_h], axis=1)                                # (L,2,H,D,Dk)

    bq_h = params["bq"].reshape(L, 1, H, DK).transpose(0, 2, 1, 3)       # (L,H,1,Dk)
    bk_h = params["bk"].reshape(L, 1, H, DK).transpose(0, 2, 1, 3)
    bqk = jnp.stack([bq_h, bk_h], axis=1)                                # (L,2,H,1,Dk)

    wv_h = params["wv"].reshape(L, D, H, DK).transpose(0, 2, 1, 3)       # (L,H,D,Dk)
    wo_h = params["wo"].reshape(L, H, DK, D)                             # (L,H,Dk,D)
    wvo = jnp.einsum("lhdk,lhke->lhde", wv_h, wo_h)                      # (L,H,D,D)

    # bv @ Wo + bo  (softmax rows sum to 1, so the value bias folds into a constant row)
    attn_b = jnp.einsum("ld,lde->le", params["bv"][:, 0], params["wo"]) + params["bo"][:, 0]

    # pack every per-layer D-vector into one array; rows per layer:
    #   [ln1w, ln1b, (bv@Wo+bo), ln2w, ln2b, b2], then [lnfw, lnfb]
    per_layer = jnp.stack([params["ln1w"][:, 0], params["ln1b"][:, 0], attn_b,
                           params["ln2w"][:, 0], params["ln2b"][:, 0],
                           params["b2"][:, 0]], axis=1)                  # (L,6,D)
    vecs = jnp.concatenate([per_layer.reshape(L * 6, D),
                            params["lnfw"], params["lnfb"]], axis=0)[:, None, :]   # (6L+2,1,D)

    operands = (x, kbias, wqk, bqk, wvo,
                params["w1"], params["b1"], params["w2"], vecs)          # 9 operands (was 21)

    out_flat = pl.pallas_call(
        functools.partial(encoder_kernel, seq_len=T),
        out_shape=jax.ShapeDtypeStruct((BT, D), jnp.float32),
        # grid-less: activations + full (tiny) weight stack live in VMEM for the whole call
        in_specs=[pl.BlockSpec(memory_space=pltpu.MemorySpace.VMEM) for _ in operands],
        out_specs=pl.BlockSpec(memory_space=pltpu.MemorySpace.VMEM),
    )(*operands)
    return out_flat.reshape(B, T, D)


# ------------------------------ reference (plain JAX) ------------------------------
def ref_encoder(tokens, mask, p):
    B, T = tokens.shape
    D, F, L, H, DK = NHID, NFF, NLAYERS, NHEAD, D_K

    def ln(x, w, b):
        mu = jnp.mean(x, axis=-1, keepdims=True)
        var = jnp.mean((x - mu) ** 2, axis=-1, keepdims=True)
        return (x - mu) / jnp.sqrt(var + LN_EPS) * w + b

    h = p["emb"][tokens] + p["pe"][None]
    key_mask0 = (mask == 0)[:, None, None, :]                 # (B,1,1,T)
    for l in range(L):
        emb = ln(h, p["ln1w"][l, 0], p["ln1b"][l, 0])
        q = emb @ p["wq"][l] + p["bq"][l, 0]
        k = emb @ p["wk"][l] + p["bk"][l, 0]
        v = emb @ p["wv"][l] + p["bv"][l, 0]
        Q = q.reshape(B, T, H, DK).transpose(0, 2, 1, 3)
        K = k.reshape(B, T, H, DK).transpose(0, 2, 1, 3)
        V = v.reshape(B, T, H, DK).transpose(0, 2, 1, 3)
        s = jnp.einsum("bhqd,bhkd->bhqk", Q, K) / math.sqrt(DK)
        s = jnp.where(key_mask0, -jnp.inf, s)
        a = jax.nn.softmax(s, axis=-1)
        o = jnp.einsum("bhqk,bhkd->bhqd", a, V).transpose(0, 2, 1, 3).reshape(B, T, D)
        o = o @ p["wo"][l] + p["bo"][l, 0]
        h1 = o + emb
        n2 = ln(h1, p["ln2w"][l, 0], p["ln2b"][l, 0])
        ff = jax.nn.relu(n2 @ p["w1"][l] + p["b1"][l, 0]) @ p["w2"][l] + p["b2"][l, 0]
        h = ff + n2
    return ln(h, p["lnfw"][0], p["lnfb"][0])


# ------------------------------------ main ------------------------------------
def make_params(key, T):
    D, F, L = NHID, NFF, NLAYERS
    ks = jax.random.split(key, 24)

    def n(k, shape, s):
        return (s * jax.random.normal(k, shape)).astype(jnp.float32)

    # sinusoidal positional encoding (PositionalEncoding buffer, sliced to T)
    pos = jnp.arange(T, dtype=jnp.float32)[:, None]
    i = jnp.arange(D // 2, dtype=jnp.float32)
    denom = 10000.0 ** (2.0 * i / D)
    ang = pos / denom
    pe = jnp.stack([jnp.sin(ang), jnp.cos(ang)], axis=-1).reshape(T, D)

    params = {
        "emb": n(ks[0], (SRC_NTOKEN, D), 0.1),
        "pe": pe,
        "ln1w": 1.0 + n(ks[1], (L, 1, D), 0.01),
        "ln1b": n(ks[2], (L, 1, D), 0.01),
        "wq": n(ks[3], (L, D, D), 0.05), "bq": n(ks[4], (L, 1, D), 0.01),
        "wk": n(ks[5], (L, D, D), 0.05), "bk": n(ks[6], (L, 1, D), 0.01),
        "wv": n(ks[7], (L, D, D), 0.05), "bv": n(ks[8], (L, 1, D), 0.01),
        "wo": n(ks[9], (L, D, D), 0.05), "bo": n(ks[10], (L, 1, D), 0.01),
        "ln2w": 1.0 + n(ks[11], (L, 1, D), 0.01),
        "ln2b": n(ks[12], (L, 1, D), 0.01),
        "w1": n(ks[13], (L, D, F), 0.05), "b1": n(ks[14], (L, 1, F), 0.01),
        "w2": n(ks[15], (L, F, D), 0.05), "b2": n(ks[16], (L, 1, D), 0.01),
        "lnfw": 1.0 + n(ks[17], (1, D), 0.01),
        "lnfb": n(ks[18], (1, D), 0.01),
    }
    return params


if __name__ == "__main__":
    B, T = 2, 8
    key = jax.random.PRNGKey(0)
    kp, kt = jax.random.split(key)

    params = make_params(kp, T)
    tokens = jax.random.randint(kt, (B, T), 0, SRC_NTOKEN, dtype=jnp.int32)
    # padding mask: 1 = valid key, 0 = padded key (second sequence has 2 padded positions)
    mask = jnp.array([[1] * T, [1] * (T - 2) + [0] * 2], dtype=jnp.int32)

    out = transformer_encoder(tokens, mask, params)
    out = jax.block_until_ready(out)

    ref = ref_encoder(tokens, mask, params)
    assert out.shape == (B, T, NHID), out.shape
    # tolerance relaxed vs 1e-4 to accommodate the EUP approximate reciprocal in the softmax
    err = float(jnp.max(jnp.abs(out - ref)))
    assert jnp.allclose(out, ref, atol=3e-3, rtol=3e-3), err

    print("KERNEL_OK")
</pallas_src>

<mosaic_0001>
module attributes {stable_mosaic.version = 11 : i64} {
  func.func @encoder_kernel(%arg0: memref<16x32xf32, #tpu.memory_space<vmem>>, %arg1: memref<1x16xf32, #tpu.memory_space<vmem>>, %arg2: memref<2x2x4x32x8xf32, #tpu.memory_space<vmem>>, %arg3: memref<2x2x4x1x8xf32, #tpu.memory_space<vmem>>, %arg4: memref<2x4x32x32xf32, #tpu.memory_space<vmem>>, %arg5: memref<2x32x64xf32, #tpu.memory_space<vmem>>, %arg6: memref<2x1x64xf32, #tpu.memory_space<vmem>>, %arg7: memref<2x64x32xf32, #tpu.memory_space<vmem>>, %arg8: memref<14x1x32xf32, #tpu.memory_space<vmem>>, %arg9: memref<16x32xf32, #tpu.memory_space<vmem>>) attributes {dimension_semantics = [], scalar_prefetch = 0 : i64, scratch_operands = 0 : i64, tpu.core_type = #tpu.core_type<tc>} {
    %c0 = arith.constant 0 : index
    %c0_0 = arith.constant 0 : index
    %0 = vector.load %arg0[%c0, %c0_0] : memref<16x32xf32, #tpu.memory_space<vmem>>, vector<16x32xf32>
    %1 = tpu.iota {dimensions = array<i32: 0>} : vector<16x16xi32>
    %2 = arith.sitofp %1 : vector<16x16xi32> to vector<16x16xf32>
    %3 = tpu.iota {dimensions = array<i32: 1>} : vector<16x16xi32>
    %4 = arith.sitofp %3 : vector<16x16xi32> to vector<16x16xf32>
    %cst = arith.constant 5.000000e-01 : f32
    %5 = vector.broadcast %cst : f32 to vector<16x16xf32>
    %6 = arith.addf %2, %5 : vector<16x16xf32>
    %cst_1 = arith.constant 1.250000e-01 : f32
    %7 = vector.broadcast %cst_1 : f32 to vector<16x16xf32>
    %8 = arith.mulf %6, %7 : vector<16x16xf32>
    %9 = math.floor %8 : vector<16x16xf32>
    %cst_2 = arith.constant 5.000000e-01 : f32
    %10 = vector.broadcast %cst_2 : f32 to vector<16x16xf32>
    %11 = arith.addf %4, %10 : vector<16x16xf32>
    %cst_3 = arith.constant 1.250000e-01 : f32
    %12 = vector.broadcast %cst_3 : f32 to vector<16x16xf32>
    %13 = arith.mulf %11, %12 : vector<16x16xf32>
    %14 = math.floor %13 : vector<16x16xf32>
    %15 = arith.cmpf oeq, %9, %14 : vector<16x16xf32>
    %c0_4 = arith.constant 0 : index
    %c0_5 = arith.constant 0 : index
    %16 = vector.load %arg1[%c0_4, %c0_5] : memref<1x16xf32, #tpu.memory_space<vmem>>, vector<1x16xf32>
    %cst_6 = arith.constant -1.000000e+09 : f32
    %17 = vector.shape_cast %16 : vector<1x16xf32> to vector<1x16xf32>
    %18 = vector.broadcast %17 : vector<1x16xf32> to vector<16x16xf32>
    %19 = vector.broadcast %cst_6 : f32 to vector<16x16xf32>
    %20 = arith.select %15, %18, %19 : vector<16x16xi1>, vector<16x16xf32>
    %c0_7 = arith.constant 0 : index
    %c0_8 = arith.constant 0 : index
    %c0_9 = arith.constant 0 : index
    %21 = vector.load %arg8[%c0_7, %c0_8, %c0_9] : memref<14x1x32xf32, #tpu.memory_space<vmem>>, vector<1x1x32xf32>
    %22 = vector.shape_cast %21 : vector<1x1x32xf32> to vector<1x32xf32>
    %c1 = arith.constant 1 : index
    %c0_10 = arith.constant 0 : index
    %c0_11 = arith.constant 0 : index
    %23 = vector.load %arg8[%c1, %c0_10, %c0_11] : memref<14x1x32xf32, #tpu.memory_space<vmem>>, vector<1x1x32xf32>
    %24 = vector.shape_cast %23 : vector<1x1x32xf32> to vector<1x32xf32>
    %cst_12 = arith.constant dense<0.000000e+00> : vector<16xf32>
    %25 = vector.multi_reduction <add>, %0, %cst_12 [1] : vector<16x32xf32> to vector<16xf32>
    %26 = vector.shape_cast %25 : vector<16xf32> to vector<16x1xf32>
    %cst_13 = arith.constant 3.200000e+01 : f32
    %27 = vector.broadcast %cst_13 : f32 to vector<16x1xf32>
    %28 = arith.divf %26, %27 : vector<16x1xf32>
    %29 = vector.broadcast %28 : vector<16x1xf32> to vector<16x32xf32>
    %30 = arith.subf %0, %29 : vector<16x32xf32>
    %31 = arith.mulf %30, %30 : vector<16x32xf32>
    %cst_14 = arith.constant dense<0.000000e+00> : vector<16xf32>
    %32 = vector.multi_reduction <add>, %31, %cst_14 [1] : vector<16x32xf32> to vector<16xf32>
    %33 = vector.shape_cast %32 : vector<16xf32> to vector<16x1xf32>
    %cst_15 = arith.constant 3.200000e+01 : f32
    %34 = vector.broadcast %cst_15 : f32 to vector<16x1xf32>
    %35 = arith.divf %33, %34 : vector<16x1xf32>
    %36 = vector.broadcast %28 : vector<16x1xf32> to vector<16x32xf32>
    %37 = arith.subf %0, %36 : vector<16x32xf32>
    %cst_16 = arith.constant 9.99999974E-6 : f32
    %38 = vector.broadcast %cst_16 : f32 to vector<16x1xf32>
    %39 = arith.addf %35, %38 : vector<16x1xf32>
    %40 = math.rsqrt %39 : vector<16x1xf32>
    %41 = vector.broadcast %40 : vector<16x1xf32> to vector<16x32xf32>
    %42 = arith.mulf %37, %41 : vector<16x32xf32>
    %43 = vector.broadcast %22 : vector<1x32xf32> to vector<16x32xf32>
    %44 = arith.mulf %42, %43 : vector<16x32xf32>
    %45 = vector.broadcast %24 : vector<1x32xf32> to vector<16x32xf32>
    %46 = arith.addf %44, %45 : vector<16x32xf32>
    %c0_17 = arith.constant 0 : index
    %c0_18 = arith.constant 0 : index
    %c0_19 = arith.constant 0 : index
    %c0_20 = arith.constant 0 : index
    %c0_21 = arith.constant 0 : index
    %47 = vector.load %arg2[%c0_17, %c0_18, %c0_19, %c0_20, %c0_21] : memref<2x2x4x32x8xf32, #tpu.memory_space<vmem>>, vector<1x1x1x32x8xf32>
    %48 = vector.shape_cast %47 : vector<1x1x1x32x8xf32> to vector<32x8xf32>
    %cst_22 = arith.constant dense<0.000000e+00> : vector<16x8xf32>
    %49 = tpu.matmul %46, %48, %cst_22 {dimension_numbers = #tpu.dot_dimension_numbers<[1], [0], [0], [1], [0, 0, 1, 1], [], []>} : vector<16x32xf32>, vector<32x8xf32>, vector<16x8xf32> -> vector<16x8xf32>
    %c0_23 = arith.constant 0 : index
    %c0_24 = arith.constant 0 : index
    %c0_25 = arith.constant 0 : index
    %c0_26 = arith.constant 0 : index
    %c0_27 = arith.constant 0 : index
    %50 = vector.load %arg3[%c0_23, %c0_24, %c0_25, %c0_26, %c0_27] : memref<2x2x4x1x8xf32, #tpu.memory_space<vmem>>, vector<1x1x1x1x8xf32>
    %51 = vector.shape_cast %50 : vector<1x1x1x1x8xf32> to vector<1x8xf32>
    %52 = vector.broadcast %51 : vector<1x8xf32> to vector<16x8xf32>
    %53 = arith.addf %49, %52 : vector<16x8xf32>
    %c0_28 = arith.constant 0 : index
    %c1_29 = arith.constant 1 : index
    %c0_30 = arith.constant 0 : index
    %c0_31 = arith.constant 0 : index
    %c0_32 = arith.constant 0 : index
    %54 = vector.load %arg2[%c0_28, %c1_29, %c0_30, %c0_31, %c0_32] : memref<2x2x4x32x8xf32, #tpu.memory_space<vmem>>, vector<1x1x1x32x8xf32>
    %55 = vector.shape_cast %54 : vector<1x1x1x32x8xf32> to vector<32x8xf32>
    %cst_33 = arith.constant dense<0.000000e+00> : vector<16x8xf32>
    %56 = tpu.matmul %46, %55, %cst_33 {dimension_numbers = #tpu.dot_dimension_numbers<[1], [0], [0], [1], [0, 0, 1, 1], [], []>} : vector<16x32xf32>, vector<32x8xf32>, vector<16x8xf32> -> vector<16x8xf32>
    %c0_34 = arith.constant 0 : index
    %c1_35 = arith.constant 1 : index
    %c0_36 = arith.constant 0 : index
    %c0_37 = arith.constant 0 : index
    %c0_38 = arith.constant 0 : index
    %57 = vector.load %arg3[%c0_34, %c1_35, %c0_36, %c0_37, %c0_38] : memref<2x2x4x1x8xf32, #tpu.memory_space<vmem>>, vector<1x1x1x1x8xf32>
    %58 = vector.shape_cast %57 : vector<1x1x1x1x8xf32> to vector<1x8xf32>
    %59 = vector.broadcast %58 : vector<1x8xf32> to vector<16x8xf32>
    %60 = arith.addf %56, %59 : vector<16x8xf32>
    %c0_39 = arith.constant 0 : index
    %c0_40 = arith.constant 0 : index
    %c0_41 = arith.constant 0 : index
    %c0_42 = arith.constant 0 : index
    %61 = vector.load %arg4[%c0_39, %c0_40, %c0_41, %c0_42] : memref<2x4x32x32xf32, #tpu.memory_space<vmem>>, vector<1x1x32x32xf32>
    %62 = vector.shape_cast %61 : vector<1x1x32x32xf32> to vector<32x32xf32>
    %cst_43 = arith.constant dense<0.000000e+00> : vector<16x32xf32>
    %63 = tpu.matmul %46, %62, %cst_43 {dimension_numbers = #tpu.dot_dimension_numbers<[1], [0], [0], [1], [0, 0, 1, 1], [], []>} : vector<16x32xf32>, vector<32x32xf32>, vector<16x32xf32> -> vector<16x32xf32>
    %cst_44 = arith.constant dense<0.000000e+00> : vector<16x16xf32>
    %64 = tpu.matmul %53, %60, %cst_44 {dimension_numbers = #tpu.dot_dimension_numbers<[1], [1], [0], [0], [0, 0, 1, 0], [], []>} : vector<16x8xf32>, vector<16x8xf32>, vector<16x16xf32> -> vector<16x16xf32>
    %cst_45 = arith.constant 0.353553385 : f32
    %65 = vector.broadcast %cst_45 : f32 to vector<16x16xf32>
    %66 = arith.mulf %64, %65 : vector<16x16xf32>
    %67 = arith.addf %66, %20 : vector<16x16xf32>
    %cst_46 = arith.constant dense<0xFF800000> : vector<16xf32>
    %68 = vector.multi_reduction <maximumf>, %67, %cst_46 [1] : vector<16x16xf32> to vector<16xf32>
    %69 = vector.shape_cast %68 : vector<16xf32> to vector<16x1xf32>
    %70 = vector.broadcast %69 : vector<16x1xf32> to vector<16x16xf32>
    %71 = arith.subf %67, %70 : vector<16x16xf32>
    %72 = math.exp %71 : vector<16x16xf32>
    %cst_47 = arith.constant dense<0.000000e+00> : vector<16xf32>
    %73 = vector.multi_reduction <add>, %72, %cst_47 [1] : vector<16x16xf32> to vector<16xf32>
    %74 = vector.shape_cast %73 : vector<16xf32> to vector<16x1xf32>
    %75 = tpu.reciprocal %74 {approx = true} : vector<16x1xf32> -> vector<16x1xf32>
    %76 = vector.broadcast %75 : vector<16x1xf32> to vector<16x16xf32>
    %77 = arith.mulf %72, %76 : vector<16x16xf32>
    %cst_48 = arith.constant dense<0.000000e+00> : vector<16x32xf32>
    %78 = tpu.matmul %77, %63, %cst_48 {dimension_numbers = #tpu.dot_dimension_numbers<[1], [0], [0], [1], [0, 0, 1, 1], [], []>} : vector<16x16xf32>, vector<16x32xf32>, vector<16x32xf32> -> vector<16x32xf32>
    %c2 = arith.constant 2 : index
    %c0_49 = arith.constant 0 : index
    %c0_50 = arith.constant 0 : index
    %79 = vector.load %arg8[%c2, %c0_49, %c0_50] : memref<14x1x32xf32, #tpu.memory_space<vmem>>, vector<1x1x32xf32>
    %80 = vector.shape_cast %79 : vector<1x1x32xf32> to vector<1x32xf32>
    %81 = vector.broadcast %80 : vector<1x32xf32> to vector<16x32xf32>
    %82 = arith.addf %78, %81 : vector<16x32xf32>
    %c0_51 = arith.constant 0 : index
    %c0_52 = arith.constant 0 : index
    %c1_53 = arith.constant 1 : index
    %c0_54 = arith.constant 0 : index
    %c0_55 = arith.constant 0 : index
    %83 = vector.load %arg2[%c0_51, %c0_52, %c1_53, %c0_54, %c0_55] : memref<2x2x4x32x8xf32, #tpu.memory_space<vmem>>, vector<1x1x1x32x8xf32>
    %84 = vector.shape_cast %83 : vector<1x1x1x32x8xf32> to vector<32x8xf32>
    %cst_56 = arith.constant dense<0.000000e+00> : vector<16x8xf32>
    %85 = tpu.matmul %46, %84, %cst_56 {dimension_numbers = #tpu.dot_dimension_numbers<[1], [0], [0], [1], [0, 0, 1, 1], [], []>} : vector<16x32xf32>, vector<32x8xf32>, vector<16x8xf32> -> vector<16x8xf32>
    %c0_57 = arith.constant 0 : index
    %c0_58 = arith.constant 0 : index
    %c1_59 = arith.constant 1 : index
    %c0_60 = arith.constant 0 : index
    %c0_61 = arith.constant 0 : index
    %86 = vector.load %arg3[%c0_57, %c0_58, %c1_59, %c0_60, %c0_61] : memref<2x2x4x1x8xf32, #tpu.memory_space<vmem>>, vector<1x1x1x1x8xf32>
    %87 = vector.shape_cast %86 : vector<1x1x1x1x8xf32> to vector<1x8xf32>
    %88 = vector.broadcast %87 : vector<1x8xf32> to vector<16x8xf32>
    %89 = arith.addf %85, %88 : vector<16x8xf32>
    %c0_62 = arith.constant 0 : index
    %c1_63 = arith.constant 1 : index
    %c1_64 = arith.constant 1 : index
    %c0_65 = arith.constant 0 : index
    %c0_66 = arith.constant 0 : index
    %90 = vector.load %arg2[%c0_62, %c1_63, %c1_64, %c0_65, %c0_66] : memref<2x2x4x32x8xf32, #tpu.memory_space<vmem>>, vector<1x1x1x32x8xf32>
    %91 = vector.shape_cast %90 : vector<1x1x1x32x8xf32> to vector<32x8xf32>
    %cst_67 = arith.constant dense<0.000000e+00> : vector<16x8xf32>
    %92 = tpu.matmul %46, %91, %cst_67 {dimension_numbers = #tpu.dot_dimension_numbers<[1], [0], [0], [1], [0, 0, 1, 1], [], []>} : vector<16x32xf32>, vector<32x8xf32>, vector<16x8xf32> -> vector<16x8xf32>
    %c0_68 = arith.constant 0 : index
    %c1_69 = arith.constant 1 : index
    %c1_70 = arith.constant 1 : index
    %c0_71 = arith.constant 0 : index
    %c0_72 = arith.constant 0 : index
    %93 = vector.load %arg3[%c0_68, %c1_69, %c1_70, %c0_71, %c0_72] : memref<2x2x4x1x8xf32, #tpu.memory_space<vmem>>, vector<1x1x1x1x8xf32>
    %94 = vector.shape_cast %93 : vector<1x1x1x1x8xf32> to vector<1x8xf32>
    %95 = vector.broadcast %94 : vector<1x8xf32> to vector<16x8xf32>
    %96 = arith.addf %92, %95 : vector<16x8xf32>
    %c0_73 = arith.constant 0 : index
    %c1_74 = arith.constant 1 : index
    %c0_75 = arith.constant 0 : index
    %c0_76 = arith.constant 0 : index
    %97 = vector.load %arg4[%c0_73, %c1_74, %c0_75, %c0_76] : memref<2x4x32x32xf32, #tpu.memory_space<vmem>>, vector<1x1x32x32xf32>
    %98 = vector.shape_cast %97 : vector<1x1x32x32xf32> to vector<32x32xf32>
    %cst_77 = arith.constant dense<0.000000e+00> : vector<16x32xf32>
    %99 = tpu.matmul %46, %98, %cst_77 {dimension_numbers = #tpu.dot_dimension_numbers<[1], [0], [0], [1], [0, 0, 1, 1], [], []>} : vector<16x32xf32>, vector<32x32xf32>, vector<16x32xf32> -> vector<16x32xf32>
    %cst_78 = arith.constant dense<0.000000e+00> : vector<16x16xf32>
    %100 = tpu.matmul %89, %96, %cst_78 {dimension_numbers = #tpu.dot_dimension_numbers<[1], [1], [0], [0], [0, 0, 1, 0], [], []>} : vector<16x8xf32>, vector<16x8xf32>, vector<16x16xf32> -> vector<16x16xf32>
    %cst_79 = arith.constant 0.353553385 : f32
    %101 = vector.broadcast %cst_79 : f32 to vector<16x16xf32>
    %102 = arith.mulf %100, %101 : vector<16x16xf32>
    %103 = arith.addf %102, %20 : vector<16x16xf32>
    %cst_80 = arith.constant dense<0xFF800000> : vector<16xf32>
    %104 = vector.multi_reduction <maximumf>, %103, %cst_80 [1] : vector<16x16xf32> to vector<16xf32>
    %105 = vector.shape_cast %104 : vector<16xf32> to vector<16x1xf32>
    %106 = vector.broadcast %105 : vector<16x1xf32> to vector<16x16xf32>
    %107 = arith.subf %103, %106 : vector<16x16xf32>
    %108 = math.exp %107 : vector<16x16xf32>
    %cst_81 = arith.constant dense<0.000000e+00> : vector<16xf32>
    %109 = vector.multi_reduction <add>, %108, %cst_81 [1] : vector<16x16xf32> to vector<16xf32>
    %110 = vector.shape_cast %109 : vector<16xf32> to vector<16x1xf32>
    %111 = tpu.reciprocal %110 {approx = true} : vector<16x1xf32> -> vector<16x1xf32>
    %112 = vector.broadcast %111 : vector<16x1xf32> to vector<16x16xf32>
    %113 = arith.mulf %108, %112 : vector<16x16xf32>
    %cst_82 = arith.constant dense<0.000000e+00> : vector<16x32xf32>
    %114 = tpu.matmul %113, %99, %cst_82 {dimension_numbers = #tpu.dot_dimension_numbers<[1], [0], [0], [1], [0, 0, 1, 1], [], []>} : vector<16x16xf32>, vector<16x32xf32>, vector<16x32xf32> -> vector<16x32xf32>
    %115 = arith.addf %82, %114 : vector<16x32xf32>
    %c0_83 = arith.constant 0 : index
    %c0_84 = arith.constant 0 : index
    %c2_85 = arith.constant 2 : index
    %c0_86 = arith.constant 0 : index
    %c0_87 = arith.constant 0 : index
    %116 = vector.load %arg2[%c0_83, %c0_84, %c2_85, %c0_86, %c0_87] : memref<2x2x4x32x8xf32, #tpu.memory_space<vmem>>, vector<1x1x1x32x8xf32>
    %117 = vector.shape_cast %116 : vector<1x1x1x32x8xf32> to vector<32x8xf32>
    %cst_88 = arith.constant dense<0.000000e+00> : vector<16x8xf32>
    %118 = tpu.matmul %46, %117, %cst_88 {dimension_numbers = #tpu.dot_dimension_numbers<[1], [0], [0], [1], [0, 0, 1, 1], [], []>} : vector<16x32xf32>, vector<32x8xf32>, vector<16x8xf32> -> vector<16x8xf32>
    %c0_89 = arith.constant 0 : index
    %c0_90 = arith.constant 0 : index
    %c2_91 = arith.constant 2 : index
    %c0_92 = arith.constant 0 : index
    %c0_93 = arith.constant 0 : index
    %119 = vector.load %arg3[%c0_89, %c0_90, %c2_91, %c0_92, %c0_93] : memref<2x2x4x1x8xf32, #tpu.memory_space<vmem>>, vector<1x1x1x1x8xf32>
    %120 = vector.shape_cast %119 : vector<1x1x1x1x8xf32> to vector<1x8xf32>
    %121 = vector.broadcast %120 : vector<1x8xf32> to vector<16x8xf32>
    %122 = arith.addf %118, %121 : vector<16x8xf32>
    %c0_94 = arith.constant 0 : index
    %c1_95 = arith.constant 1 : index
    %c2_96 = arith.constant 2 : index
    %c0_97 = arith.constant 0 : index
    %c0_98 = arith.constant 0 : index
    %123 = vector.load %arg2[%c0_94, %c1_95, %c2_96, %c0_97, %c0_98] : memref<2x2x4x32x8xf32, #tpu.memory_space<vmem>>, vector<1x1x1x32x8xf32>
    %124 = vector.shape_cast %123 : vector<1x1x1x32x8xf32> to vector<32x8xf32>
    %cst_99 = arith.constant dense<0.000000e+00> : vector<16x8xf32>
    %125 = tpu.matmul %46, %124, %cst_99 {dimension_numbers = #tpu.dot_dimension_numbers<[1], [0], [0], [1], [0, 0, 1, 1], [], []>} : vector<16x32xf32>, vector<32x8xf32>, vector<16x8xf32> -> vector<16x8xf32>
    %c0_100 = arith.constant 0 : index
    %c1_101 = arith.constant 1 : index
    %c2_102 = arith.constant 2 : index
    %c0_103 = arith.constant 0 : index
    %c0_104 = arith.constant 0 : index
    %126 = vector.load %arg3[%c0_100, %c1_101, %c2_102, %c0_103, %c0_104] : memref<2x2x4x1x8xf32, #tpu.memory_space<vmem>>, vector<1x1x1x1x8xf32>
    %127 = vector.shape_cast %126 : vector<1x1x1x1x8xf32> to vector<1x8xf32>
    %128 = vector.broadcast %127 : vector<1x8xf32> to vector<16x8xf32>
    %129 = arith.addf %125, %128 : vector<16x8xf32>
    %c0_105 = arith.constant 0 : index
    %c2_106 = arith.constant 2 : index
    %c0_107 = arith.constant 0 : index
    %c0_108 = arith.constant 0 : index
    %130 = vector.load %arg4[%c0_105, %c2_106, %c0_107, %c0_108] : memref<2x4x32x32xf32, #tpu.memory_space<vmem>>, vector<1x1x32x32xf32>
    %131 = vector.shape_cast %130 : vector<1x1x32x32xf32> to vector<32x32xf32>
    %cst_109 = arith.constant dense<0.000000e+00> : vector<16x32xf32>
    %132 = tpu.matmul %46, %131, %cst_109 {dimension_numbers = #tpu.dot_dimension_numbers<[1], [0], [0], [1], [0, 0, 1, 1], [], []>} : vector<16x32xf32>, vector<32x32xf32>, vector<16x32xf32> -> vector<16x32xf32>
    %cst_110 = arith.constant dense<0.000000e+00> : vector<16x16xf32>
    %133 = tpu.matmul %122, %129, %cst_110 {dimension_numbers = #tpu.dot_dimension_numbers<[1], [1], [0], [0], [0, 0, 1, 0], [], []>} : vector<16x8xf32>, vector<16x8xf32>, vector<16x16xf32> -> vector<16x16xf32>
    %cst_111 = arith.constant 0.353553385 : f32
    %134 = vector.broadcast %cst_111 : f32 to vector<16x16xf32>
    %135 = arith.mulf %133, %134 : vector<16x16xf32>
    %136 = arith.addf %135, %20 : vector<16x16xf32>
    %cst_112 = arith.constant dense<0xFF800000> : vector<16xf32>
    %137 = vector.multi_reduction <maximumf>, %136, %cst_112 [1] : vector<16x16xf32> to vector<16xf32>
    %138 = vector.shape_cast %137 : vector<16xf32> to vector<16x1xf32>
    %139 = vector.broadcast %138 : vector<16x1xf32> to vector<16x16xf32>
    %140 = arith.subf %136, %139 : vector<16x16xf32>
    %141 = math.exp %140 : vector<16x16xf32>
    %cst_113 = arith.constant dense<0.000000e+00> : vector<16xf32>
    %142 = vector.multi_reduction <add>, %141, %cst_113 [1] : vector<16x16xf32> to vector<16xf32>
    %143 = vector.shape_cast %142 : vector<16xf32> to vector<16x1xf32>
    %144 = tpu.reciprocal %143 {approx = true} : vector<16x1xf32> -> vector<16x1xf32>
    %145 = vector.broadcast %144 : vector<16x1xf32> to vector<16x16xf32>
    %146 = arith.mulf %141, %145 : vector<16x16xf32>
    %cst_114 = arith.constant dense<0.000000e+00> : vector<16x32xf32>
    %147 = tpu.matmul %146, %132, %cst_114 {dimension_numbers = #tpu.dot_dimension_numbers<[1], [0], [0], [1], [0, 0, 1, 1], [], []>} : vector<16x16xf32>, vector<16x32xf32>, vector<16x32xf32> -> vector<16x32xf32>
    %148 = arith.addf %115, %147 : vector<16x32xf32>
    %c0_115 = arith.constant 0 : index
    %c0_116 = arith.constant 0 : index
    %c3 = arith.constant 3 : index
    %c0_117 = arith.constant 0 : index
    %c0_118 = arith.constant 0 : index
    %149 = vector.load %arg2[%c0_115, %c0_116, %c3, %c0_117, %c0_118] : memref<2x2x4x32x8xf32, #tpu.memory_space<vmem>>, vector<1x1x1x32x8xf32>
    %150 = vector.shape_cast %149 : vector<1x1x1x32x8xf32> to vector<32x8xf32>
    %cst_119 = arith.constant dense<0.000000e+00> : vector<16x8xf32>
    %151 = tpu.matmul %46, %150, %cst_119 {dimension_numbers = #tpu.dot_dimension_numbers<[1], [0], [0], [1], [0, 0, 1, 1], [], []>} : vector<16x32xf32>, vector<32x8xf32>, vector<16x8xf32> -> vector<16x8xf32>
    %c0_120 = arith.constant 0 : index
    %c0_121 = arith.constant 0 : index
    %c3_122 = arith.constant 3 : index
    %c0_123 = arith.constant 0 : index
    %c0_124 = arith.constant 0 : index
    %152 = vector.load %arg3[%c0_120, %c0_121, %c3_122, %c0_123, %c0_124] : memref<2x2x4x1x8xf32, #tpu.memory_space<vmem>>, vector<1x1x1x1x8xf32>
    %153 = vector.shape_cast %152 : vector<1x1x1x1x8xf32> to vector<1x8xf32>
    %154 = vector.broadcast %153 : vector<1x8xf32> to vector<16x8xf32>
    %155 = arith.addf %151, %154 : vector<16x8xf32>
    %c0_125 = arith.constant 0 : index
    %c1_126 = arith.constant 1 : index
    %c3_127 = arith.constant 3 : index
    %c0_128 = arith.constant 0 : index
    %c0_129 = arith.constant 0 : index
    %156 = vector.load %arg2[%c0_125, %c1_126, %c3_127, %c0_128, %c0_129] : memref<2x2x4x32x8xf32, #tpu.memory_space<vmem>>, vector<1x1x1x32x8xf32>
    %157 = vector.shape_cast %156 : vector<1x1x1x32x8xf32> to vector<32x8xf32>
    %cst_130 = arith.constant dense<0.000000e+00> : vector<16x8xf32>
    %158 = tpu.matmul %46, %157, %cst_130 {dimension_numbers = #tpu.dot_dimension_numbers<[1], [0], [0], [1], [0, 0, 1, 1], [], []>} : vector<16x32xf32>, vector<32x8xf32>, vector<16x8xf32> -> vector<16x8xf32>
    %c0_131 = arith.constant 0 : index
    %c1_132 = arith.constant 1 : index
    %c3_133 = arith.constant 3 : index
    %c0_134 = arith.constant 0 : index
    %c0_135 = arith.constant 0 : index
    %159 = vector.load %arg3[%c0_131, %c1_132, %c3_133, %c0_134, %c0_135] : memref<2x2x4x1x8xf32, #tpu.memory_space<vmem>>, vector<1x1x1x1x8xf32>
    %160 = vector.shape_cast %159 : vector<1x1x1x1x8xf32> to vector<1x8xf32>
    %161 = vector.broadcast %160 : vector<1x8xf32> to vector<16x8xf32>
    %162 = arith.addf %158, %161 : vector<16x8xf32>
    %c0_136 = arith.constant 0 : index
    %c3_137 = arith.constant 3 : index
    %c0_138 = arith.constant 0 : index
    %c0_139 = arith.constant 0 : index
    %163 = vector.load %arg4[%c0_136, %c3_137, %c0_138, %c0_139] : memref<2x4x32x32xf32, #tpu.memory_space<vmem>>, vector<1x1x32x32xf32>
    %164 = vector.shape_cast %163 : vector<1x1x32x32xf32> to vector<32x32xf32>
    %cst_140 = arith.constant dense<0.000000e+00> : vector<16x32xf32>
    %165 = tpu.matmul %46, %164, %cst_140 {dimension_numbers = #tpu.dot_dimension_numbers<[1], [0], [0], [1], [0, 0, 1, 1], [], []>} : vector<16x32xf32>, vector<32x32xf32>, vector<16x32xf32> -> vector<16x32xf32>
    %cst_141 = arith.constant dense<0.000000e+00> : vector<16x16xf32>
    %166 = tpu.matmul %155, %162, %cst_141 {dimension_numbers = #tpu.dot_dimension_numbers<[1], [1], [0], [0], [0, 0, 1, 0], [], []>} : vector<16x8xf32>, vector<16x8xf32>, vector<16x16xf32> -> vector<16x16xf32>
    %cst_142 = arith.constant 0.353553385 : f32
    %167 = vector.broadcast %cst_142 : f32 to vector<16x16xf32>
    %168 = arith.mulf %166, %167 : vector<16x16xf32>
    %169 = arith.addf %168, %20 : vector<16x16xf32>
    %cst_143 = arith.constant dense<0xFF800000> : vector<16xf32>
    %170 = vector.multi_reduction <maximumf>, %169, %cst_143 [1] : vector<16x16xf32> to vector<16xf32>
    %171 = vector.shape_cast %170 : vector<16xf32> to vector<16x1xf32>
    %172 = vector.broadcast %171 : vector<16x1xf32> to vector<16x16xf32>
    %173 = arith.subf %169, %172 : vector<16x16xf32>
    %174 = math.exp %173 : vector<16x16xf32>
    %cst_144 = arith.constant dense<0.000000e+00> : vector<16xf32>
    %175 = vector.multi_reduction <add>, %174, %cst_144 [1] : vector<16x16xf32> to vector<16xf32>
    %176 = vector.shape_cast %175 : vector<16xf32> to vector<16x1xf32>
    %177 = tpu.reciprocal %176 {approx = true} : vector<16x1xf32> -> vector<16x1xf32>
    %178 = vector.broadcast %177 : vector<16x1xf32> to vector<16x16xf32>
    %179 = arith.mulf %174, %178 : vector<16x16xf32>
    %cst_145 = arith.constant dense<0.000000e+00> : vector<16x32xf32>
    %180 = tpu.matmul %179, %165, %cst_145 {dimension_numbers = #tpu.dot_dimension_numbers<[1], [0], [0], [1], [0, 0, 1, 1], [], []>} : vector<16x16xf32>, vector<16x32xf32>, vector<16x32xf32> -> vector<16x32xf32>
    %181 = arith.addf %148, %180 : vector<16x32xf32>
    %182 = arith.addf %181, %46 : vector<16x32xf32>
    %c3_146 = arith.constant 3 : index
    %c0_147 = arith.constant 0 : index
    %c0_148 = arith.constant 0 : index
    %183 = vector.load %arg8[%c3_146, %c0_147, %c0_148] : memref<14x1x32xf32, #tpu.memory_space<vmem>>, vector<1x1x32xf32>
    %184 = vector.shape_cast %183 : vector<1x1x32xf32> to vector<1x32xf32>
    %c4 = arith.constant 4 : index
    %c0_149 = arith.constant 0 : index
    %c0_150 = arith.constant 0 : index
    %185 = vector.load %arg8[%c4, %c0_149, %c0_150] : memref<14x1x32xf32, #tpu.memory_space<vmem>>, vector<1x1x32xf32>
    %186 = vector.shape_cast %185 : vector<1x1x32xf32> to vector<1x32xf32>
    %cst_151 = arith.constant dense<0.000000e+00> : vector<16xf32>
    %187 = vector.multi_reduction <add>, %182, %cst_151 [1] : vector<16x32xf32> to vector<16xf32>
    %188 = vector.shape_cast %187 : vector<16xf32> to vector<16x1xf32>
    %cst_152 = arith.constant 3.200000e+01 : f32
    %189 = vector.broadcast %cst_152 : f32 to vector<16x1xf32>
    %190 = arith.divf %188, %189 : vector<16x1xf32>
    %191 = vector.broadcast %190 : vector<16x1xf32> to vector<16x32xf32>
    %192 = arith.subf %182, %191 : vector<16x32xf32>
    %193 = arith.mulf %192, %192 : vector<16x32xf32>
    %cst_153 = arith.constant dense<0.000000e+00> : vector<16xf32>
    %194 = vector.multi_reduction <add>, %193, %cst_153 [1] : vector<16x32xf32> to vector<16xf32>
    %195 = vector.shape_cast %194 : vector<16xf32> to vector<16x1xf32>
    %cst_154 = arith.constant 3.200000e+01 : f32
    %196 = vector.broadcast %cst_154 : f32 to vector<16x1xf32>
    %197 = arith.divf %195, %196 : vector<16x1xf32>
    %198 = vector.broadcast %190 : vector<16x1xf32> to vector<16x32xf32>
    %199 = arith.subf %182, %198 : vector<16x32xf32>
    %cst_155 = arith.constant 9.99999974E-6 : f32
    %200 = vector.broadcast %cst_155 : f32 to vector<16x1xf32>
    %201 = arith.addf %197, %200 : vector<16x1xf32>
    %202 = math.rsqrt %201 : vector<16x1xf32>
    %203 = vector.broadcast %202 : vector<16x1xf32> to vector<16x32xf32>
    %204 = arith.mulf %199, %203 : vector<16x32xf32>
    %205 = vector.broadcast %184 : vector<1x32xf32> to vector<16x32xf32>
    %206 = arith.mulf %204, %205 : vector<16x32xf32>
    %207 = vector.broadcast %186 : vector<1x32xf32> to vector<16x32xf32>
    %208 = arith.addf %206, %207 : vector<16x32xf32>
    %c0_156 = arith.constant 0 : index
    %c0_157 = arith.constant 0 : index
    %c0_158 = arith.constant 0 : index
    %209 = vector.load %arg5[%c0_156, %c0_157, %c0_158] : memref<2x32x64xf32, #tpu.memory_space<vmem>>, vector<1x32x64xf32>
    %210 = vector.shape_cast %209 : vector<1x32x64xf32> to vector<32x64xf32>
    %cst_159 = arith.constant dense<0.000000e+00> : vector<16x64xf32>
    %211 = tpu.matmul %208, %210, %cst_159 {dimension_numbers = #tpu.dot_dimension_numbers<[1], [0], [0], [1], [0, 0, 1, 1], [], []>} : vector<16x32xf32>, vector<32x64xf32>, vector<16x64xf32> -> vector<16x64xf32>
    %c0_160 = arith.constant 0 : index
    %c0_161 = arith.constant 0 : index
    %c0_162 = arith.constant 0 : index
    %212 = vector.load %arg6[%c0_160, %c0_161, %c0_162] : memref<2x1x64xf32, #tpu.memory_space<vmem>>, vector<1x1x64xf32>
    %213 = vector.shape_cast %212 : vector<1x1x64xf32> to vector<1x64xf32>
    %214 = vector.broadcast %213 : vector<1x64xf32> to vector<16x64xf32>
    %215 = arith.addf %211, %214 : vector<16x64xf32>
    %cst_163 = arith.constant 0.000000e+00 : f32
    %216 = vector.broadcast %cst_163 : f32 to vector<16x64xf32>
    %217 = arith.maximumf %215, %216 : vector<16x64xf32>
    %c0_164 = arith.constant 0 : index
    %c0_165 = arith.constant 0 : index
    %c0_166 = arith.constant 0 : index
    %218 = vector.load %arg7[%c0_164, %c0_165, %c0_166] : memref<2x64x32xf32, #tpu.memory_space<vmem>>, vector<1x64x32xf32>
    %219 = vector.shape_cast %218 : vector<1x64x32xf32> to vector<64x32xf32>
    %cst_167 = arith.constant dense<0.000000e+00> : vector<16x32xf32>
    %220 = tpu.matmul %217, %219, %cst_167 {dimension_numbers = #tpu.dot_dimension_numbers<[1], [0], [0], [1], [0, 0, 1, 1], [], []>} : vector<16x64xf32>, vector<64x32xf32>, vector<16x32xf32> -> vector<16x32xf32>
    %c5 = arith.constant 5 : index
    %c0_168 = arith.constant 0 : index
    %c0_169 = arith.constant 0 : index
    %221 = vector.load %arg8[%c5, %c0_168, %c0_169] : memref<14x1x32xf32, #tpu.memory_space<vmem>>, vector<1x1x32xf32>
    %222 = vector.shape_cast %221 : vector<1x1x32xf32> to vector<1x32xf32>
    %223 = vector.broadcast %222 : vector<1x32xf32> to vector<16x32xf32>
    %224 = arith.addf %220, %223 : vector<16x32xf32>
    %225 = arith.addf %224, %208 : vector<16x32xf32>
    %c6 = arith.constant 6 : index
    %c0_170 = arith.constant 0 : index
    %c0_171 = arith.constant 0 : index
    %226 = vector.load %arg8[%c6, %c0_170, %c0_171] : memref<14x1x32xf32, #tpu.memory_space<vmem>>, vector<1x1x32xf32>
    %227 = vector.shape_cast %226 : vector<1x1x32xf32> to vector<1x32xf32>
    %c7 = arith.constant 7 : index
    %c0_172 = arith.constant 0 : index
    %c0_173 = arith.constant 0 : index
    %228 = vector.load %arg8[%c7, %c0_172, %c0_173] : memref<14x1x32xf32, #tpu.memory_space<vmem>>, vector<1x1x32xf32>
    %229 = vector.shape_cast %228 : vector<1x1x32xf32> to vector<1x32xf32>
    %cst_174 = arith.constant dense<0.000000e+00> : vector<16xf32>
    %230 = vector.multi_reduction <add>, %225, %cst_174 [1] : vector<16x32xf32> to vector<16xf32>
    %231 = vector.shape_cast %230 : vector<16xf32> to vector<16x1xf32>
    %cst_175 = arith.constant 3.200000e+01 : f32
    %232 = vector.broadcast %cst_175 : f32 to vector<16x1xf32>
    %233 = arith.divf %231, %232 : vector<16x1xf32>
    %234 = vector.broadcast %233 : vector<16x1xf32> to vector<16x32xf32>
    %235 = arith.subf %225, %234 : vector<16x32xf32>
    %236 = arith.mulf %235, %235 : vector<16x32xf32>
    %cst_176 = arith.constant dense<0.000000e+00> : vector<16xf32>
    %237 = vector.multi_reduction <add>, %236, %cst_176 [1] : vector<16x32xf32> to vector<16xf32>
    %238 = vector.shape_cast %237 : vector<16xf32> to vector<16x1xf32>
    %cst_177 = arith.constant 3.200000e+01 : f32
    %239 = vector.broadcast %cst_177 : f32 to vector<16x1xf32>
    %240 = arith.divf %238, %239 : vector<16x1xf32>
    %241 = vector.broadcast %233 : vector<16x1xf32> to vector<16x32xf32>
    %242 = arith.subf %225, %241 : vector<16x32xf32>
    %cst_178 = arith.constant 9.99999974E-6 : f32
    %243 = vector.broadcast %cst_178 : f32 to vector<16x1xf32>
    %244 = arith.addf %240, %243 : vector<16x1xf32>
    %245 = math.rsqrt %244 : vector<16x1xf32>
    %246 = vector.broadcast %245 : vector<16x1xf32> to vector<16x32xf32>
    %247 = arith.mulf %242, %246 : vector<16x32xf32>
    %248 = vector.broadcast %227 : vector<1x32xf32> to vector<16x32xf32>
    %249 = arith.mulf %247, %248 : vector<16x32xf32>
    %250 = vector.broadcast %229 : vector<1x32xf32> to vector<16x32xf32>
    %251 = arith.addf %249, %250 : vector<16x32xf32>
    %c1_179 = arith.constant 1 : index
    %c0_180 = arith.constant 0 : index
    %c0_181 = arith.constant 0 : index
    %c0_182 = arith.constant 0 : index
    %c0_183 = arith.constant 0 : index
    %252 = vector.load %arg2[%c1_179, %c0_180, %c0_181, %c0_182, %c0_183] : memref<2x2x4x32x8xf32, #tpu.memory_space<vmem>>, vector<1x1x1x32x8xf32>
    %253 = vector.shape_cast %252 : vector<1x1x1x32x8xf32> to vector<32x8xf32>
    %cst_184 = arith.constant dense<0.000000e+00> : vector<16x8xf32>
    %254 = tpu.matmul %251, %253, %cst_184 {dimension_numbers = #tpu.dot_dimension_numbers<[1], [0], [0], [1], [0, 0, 1, 1], [], []>} : vector<16x32xf32>, vector<32x8xf32>, vector<16x8xf32> -> vector<16x8xf32>
    %c1_185 = arith.constant 1 : index
    %c0_186 = arith.constant 0 : index
    %c0_187 = arith.constant 0 : index
    %c0_188 = arith.constant 0 : index
    %c0_189 = arith.constant 0 : index
    %255 = vector.load %arg3[%c1_185, %c0_186, %c0_187, %c0_188, %c0_189] : memref<2x2x4x1x8xf32, #tpu.memory_space<vmem>>, vector<1x1x1x1x8xf32>
    %256 = vector.shape_cast %255 : vector<1x1x1x1x8xf32> to vector<1x8xf32>
    %257 = vector.broadcast %256 : vector<1x8xf32> to vector<16x8xf32>
    %258 = arith.addf %254, %257 : vector<16x8xf32>
    %c1_190 = arith.constant 1 : index
    %c1_191 = arith.constant 1 : index
    %c0_192 = arith.constant 0 : index
    %c0_193 = arith.constant 0 : index
    %c0_194 = arith.constant 0 : index
    %259 = vector.load %arg2[%c1_190, %c1_191, %c0_192, %c0_193, %c0_194] : memref<2x2x4x32x8xf32, #tpu.memory_space<vmem>>, vector<1x1x1x32x8xf32>
    %260 = vector.shape_cast %259 : vector<1x1x1x32x8xf32> to vector<32x8xf32>
    %cst_195 = arith.constant dense<0.000000e+00> : vector<16x8xf32>
    %261 = tpu.matmul %251, %260, %cst_195 {dimension_numbers = #tpu.dot_dimension_numbers<[1], [0], [0], [1], [0, 0, 1, 1], [], []>} : vector<16x32xf32>, vector<32x8xf32>, vector<16x8xf32> -> vector<16x8xf32>
    %c1_196 = arith.constant 1 : index
    %c1_197 = arith.constant 1 : index
    %c0_198 = arith.constant 0 : index
    %c0_199 = arith.constant 0 : index
    %c0_200 = arith.constant 0 : index
    %262 = vector.load %arg3[%c1_196, %c1_197, %c0_198, %c0_199, %c0_200] : memref<2x2x4x1x8xf32, #tpu.memory_space<vmem>>, vector<1x1x1x1x8xf32>
    %263 = vector.shape_cast %262 : vector<1x1x1x1x8xf32> to vector<1x8xf32>
    %264 = vector.broadcast %263 : vector<1x8xf32> to vector<16x8xf32>
    %265 = arith.addf %261, %264 : vector<16x8xf32>
    %c1_201 = arith.constant 1 : index
    %c0_202 = arith.constant 0 : index
    %c0_203 = arith.constant 0 : index
    %c0_204 = arith.constant 0 : index
    %266 = vector.load %arg4[%c1_201, %c0_202, %c0_203, %c0_204] : memref<2x4x32x32xf32, #tpu.memory_space<vmem>>, vector<1x1x32x32xf32>
    %267 = vector.shape_cast %266 : vector<1x1x32x32xf32> to vector<32x32xf32>
    %cst_205 = arith.constant dense<0.000000e+00> : vector<16x32xf32>
    %268 = tpu.matmul %251, %267, %cst_205 {dimension_numbers = #tpu.dot_dimension_numbers<[1], [0], [0], [1], [0, 0, 1, 1], [], []>} : vector<16x32xf32>, vector<32x32xf32>, vector<16x32xf32> -> vector<16x32xf32>
    %cst_206 = arith.constant dense<0.000000e+00> : vector<16x16xf32>
    %269 = tpu.matmul %258, %265, %cst_206 {dimension_numbers = #tpu.dot_dimension_numbers<[1], [1], [0], [0], [0, 0, 1, 0], [], []>} : vector<16x8xf32>, vector<16x8xf32>, vector<16x16xf32> -> vector<16x16xf32>
    %cst_207 = arith.constant 0.353553385 : f32
    %270 = vector.broadcast %cst_207 : f32 to vector<16x16xf32>
    %271 = arith.mulf %269, %270 : vector<16x16xf32>
    %272 = arith.addf %271, %20 : vector<16x16xf32>
    %cst_208 = arith.constant dense<0xFF800000> : vector<16xf32>
    %273 = vector.multi_reduction <maximumf>, %272, %cst_208 [1] : vector<16x16xf32> to vector<16xf32>
    %274 = vector.shape_cast %273 : vector<16xf32> to vector<16x1xf32>
    %275 = vector.broadcast %274 : vector<16x1xf32> to vector<16x16xf32>
    %276 = arith.subf %272, %275 : vector<16x16xf32>
    %277 = math.exp %276 : vector<16x16xf32>
    %cst_209 = arith.constant dense<0.000000e+00> : vector<16xf32>
    %278 = vector.multi_reduction <add>, %277, %cst_209 [1] : vector<16x16xf32> to vector<16xf32>
    %279 = vector.shape_cast %278 : vector<16xf32> to vector<16x1xf32>
    %280 = tpu.reciprocal %279 {approx = true} : vector<16x1xf32> -> vector<16x1xf32>
    %281 = vector.broadcast %280 : vector<16x1xf32> to vector<16x16xf32>
    %282 = arith.mulf %277, %281 : vector<16x16xf32>
    %cst_210 = arith.constant dense<0.000000e+00> : vector<16x32xf32>
    %283 = tpu.matmul %282, %268, %cst_210 {dimension_numbers = #tpu.dot_dimension_numbers<[1], [0], [0], [1], [0, 0, 1, 1], [], []>} : vector<16x16xf32>, vector<16x32xf32>, vector<16x32xf32> -> vector<16x32xf32>
    %c8 = arith.constant 8 : index
    %c0_211 = arith.constant 0 : index
    %c0_212 = arith.constant 0 : index
    %284 = vector.load %arg8[%c8, %c0_211, %c0_212] : memref<14x1x32xf32, #tpu.memory_space<vmem>>, vector<1x1x32xf32>
    %285 = vector.shape_cast %284 : vector<1x1x32xf32> to vector<1x32xf32>
    %286 = vector.broadcast %285 : vector<1x32xf32> to vector<16x32xf32>
    %287 = arith.addf %283, %286 : vector<16x32xf32>
    %c1_213 = arith.constant 1 : index
    %c0_214 = arith.constant 0 : index
    %c1_215 = arith.constant 1 : index
    %c0_216 = arith.constant 0 : index
    %c0_217 = arith.constant 0 : index
    %288 = vector.load %arg2[%c1_213, %c0_214, %c1_215, %c0_216, %c0_217] : memref<2x2x4x32x8xf32, #tpu.memory_space<vmem>>, vector<1x1x1x32x8xf32>
    %289 = vector.shape_cast %288 : vector<1x1x1x32x8xf32> to vector<32x8xf32>
    %cst_218 = arith.constant dense<0.000000e+00> : vector<16x8xf32>
    %290 = tpu.matmul %251, %289, %cst_218 {dimension_numbers = #tpu.dot_dimension_numbers<[1], [0], [0], [1], [0, 0, 1, 1], [], []>} : vector<16x32xf32>, vector<32x8xf32>, vector<16x8xf32> -> vector<16x8xf32>
    %c1_219 = arith.constant 1 : index
    %c0_220 = arith.constant 0 : index
    %c1_221 = arith.constant 1 : index
    %c0_222 = arith.constant 0 : index
    %c0_223 = arith.constant 0 : index
    %291 = vector.load %arg3[%c1_219, %c0_220, %c1_221, %c0_222, %c0_223] : memref<2x2x4x1x8xf32, #tpu.memory_space<vmem>>, vector<1x1x1x1x8xf32>
    %292 = vector.shape_cast %291 : vector<1x1x1x1x8xf32> to vector<1x8xf32>
    %293 = vector.broadcast %292 : vector<1x8xf32> to vector<16x8xf32>
    %294 = arith.addf %290, %293 : vector<16x8xf32>
    %c1_224 = arith.constant 1 : index
    %c1_225 = arith.constant 1 : index
    %c1_226 = arith.constant 1 : index
    %c0_227 = arith.constant 0 : index
    %c0_228 = arith.constant 0 : index
    %295 = vector.load %arg2[%c1_224, %c1_225, %c1_226, %c0_227, %c0_228] : memref<2x2x4x32x8xf32, #tpu.memory_space<vmem>>, vector<1x1x1x32x8xf32>
    %296 = vector.shape_cast %295 : vector<1x1x1x32x8xf32> to vector<32x8xf32>
    %cst_229 = arith.constant dense<0.000000e+00> : vector<16x8xf32>
    %297 = tpu.matmul %251, %296, %cst_229 {dimension_numbers = #tpu.dot_dimension_numbers<[1], [0], [0], [1], [0, 0, 1, 1], [], []>} : vector<16x32xf32>, vector<32x8xf32>, vector<16x8xf32> -> vector<16x8xf32>
    %c1_230 = arith.constant 1 : index
    %c1_231 = arith.constant 1 : index
    %c1_232 = arith.constant 1 : index
    %c0_233 = arith.constant 0 : index
    %c0_234 = arith.constant 0 : index
    %298 = vector.load %arg3[%c1_230, %c1_231, %c1_232, %c0_233, %c0_234] : memref<2x2x4x1x8xf32, #tpu.memory_space<vmem>>, vector<1x1x1x1x8xf32>
    %299 = vector.shape_cast %298 : vector<1x1x1x1x8xf32> to vector<1x8xf32>
    %300 = vector.broadcast %299 : vector<1x8xf32> to vector<16x8xf32>
    %301 = arith.addf %297, %300 : vector<16x8xf32>
    %c1_235 = arith.constant 1 : index
    %c1_236 = arith.constant 1 : index
    %c0_237 = arith.constant 0 : index
    %c0_238 = arith.constant 0 : index
    %302 = vector.load %arg4[%c1_235, %c1_236, %c0_237, %c0_238] : memref<2x4x32x32xf32, #tpu.memory_space<vmem>>, vector<1x1x32x32xf32>
    %303 = vector.shape_cast %302 : vector<1x1x32x32xf32> to vector<32x32xf32>
    %cst_239 = arith.constant dense<0.000000e+00> : vector<16x32xf32>
    %304 = tpu.matmul %251, %303, %cst_239 {dimension_numbers = #tpu.dot_dimension_numbers<[1], [0], [0], [1], [0, 0, 1, 1], [], []>} : vector<16x32xf32>, vector<32x32xf32>, vector<16x32xf32> -> vector<16x32xf32>
    %cst_240 = arith.constant dense<0.000000e+00> : vector<16x16xf32>
    %305 = tpu.matmul %294, %301, %cst_240 {dimension_numbers = #tpu.dot_dimension_numbers<[1], [1], [0], [0], [0, 0, 1, 0], [], []>} : vector<16x8xf32>, vector<16x8xf32>, vector<16x16xf32> -> vector<16x16xf32>
    %cst_241 = arith.constant 0.353553385 : f32
    %306 = vector.broadcast %cst_241 : f32 to vector<16x16xf32>
    %307 = arith.mulf %305, %306 : vector<16x16xf32>
    %308 = arith.addf %307, %20 : vector<16x16xf32>
    %cst_242 = arith.constant dense<0xFF800000> : vector<16xf32>
    %309 = vector.multi_reduction <maximumf>, %308, %cst_242 [1] : vector<16x16xf32> to vector<16xf32>
    %310 = vector.shape_cast %309 : vector<16xf32> to vector<16x1xf32>
    %311 = vector.broadcast %310 : vector<16x1xf32> to vector<16x16xf32>
    %312 = arith.subf %308, %311 : vector<16x16xf32>
    %313 = math.exp %312 : vector<16x16xf32>
    %cst_243 = arith.constant dense<0.000000e+00> : vector<16xf32>
    %314 = vector.multi_reduction <add>, %313, %cst_243 [1] : vector<16x16xf32> to vector<16xf32>
    %315 = vector.shape_cast %314 : vector<16xf32> to vector<16x1xf32>
    %316 = tpu.reciprocal %315 {approx = true} : vector<16x1xf32> -> vector<16x1xf32>
    %317 = vector.broadcast %316 : vector<16x1xf32> to vector<16x16xf32>
    %318 = arith.mulf %313, %317 : vector<16x16xf32>
    %cst_244 = arith.constant dense<0.000000e+00> : vector<16x32xf32>
    %319 = tpu.matmul %318, %304, %cst_244 {dimension_numbers = #tpu.dot_dimension_numbers<[1], [0], [0], [1], [0, 0, 1, 1], [], []>} : vector<16x16xf32>, vector<16x32xf32>, vector<16x32xf32> -> vector<16x32xf32>
    %320 = arith.addf %287, %319 : vector<16x32xf32>
    %c1_245 = arith.constant 1 : index
    %c0_246 = arith.constant 0 : index
    %c2_247 = arith.constant 2 : index
    %c0_248 = arith.constant 0 : index
    %c0_249 = arith.constant 0 : index
    %321 = vector.load %arg2[%c1_245, %c0_246, %c2_247, %c0_248, %c0_249] : memref<2x2x4x32x8xf32, #tpu.memory_space<vmem>>, vector<1x1x1x32x8xf32>
    %322 = vector.shape_cast %321 : vector<1x1x1x32x8xf32> to vector<32x8xf32>
    %cst_250 = arith.constant dense<0.000000e+00> : vector<16x8xf32>
    %323 = tpu.matmul %251, %322, %cst_250 {dimension_numbers = #tpu.dot_dimension_numbers<[1], [0], [0], [1], [0, 0, 1, 1], [], []>} : vector<16x32xf32>, vector<32x8xf32>, vector<16x8xf32> -> vector<16x8xf32>
    %c1_251 = arith.constant 1 : index
    %c0_252 = arith.constant 0 : index
    %c2_253 = arith.constant 2 : index
    %c0_254 = arith.constant 0 : index
    %c0_255 = arith.constant 0 : index
    %324 = vector.load %arg3[%c1_251, %c0_252, %c2_253, %c0_254, %c0_255] : memref<2x2x4x1x8xf32, #tpu.memory_space<vmem>>, vector<1x1x1x1x8xf32>
    %325 = vector.shape_cast %324 : vector<1x1x1x1x8xf32> to vector<1x8xf32>
    %326 = vector.broadcast %325 : vector<1x8xf32> to vector<16x8xf32>
    %327 = arith.addf %323, %326 : vector<16x8xf32>
    %c1_256 = arith.constant 1 : index
    %c1_257 = arith.constant 1 : index
    %c2_258 = arith.constant 2 : index
    %c0_259 = arith.constant 0 : index
    %c0_260 = arith.constant 0 : index
    %328 = vector.load %arg2[%c1_256, %c1_257, %c2_258, %c0_259, %c0_260] : memref<2x2x4x32x8xf32, #tpu.memory_space<vmem>>, vector<1x1x1x32x8xf32>
    %329 = vector.shape_cast %328 : vector<1x1x1x32x8xf32> to vector<32x8xf32>
    %cst_261 = arith.constant dense<0.000000e+00> : vector<16x8xf32>
    %330 = tpu.matmul %251, %329, %cst_261 {dimension_numbers = #tpu.dot_dimension_numbers<[1], [0], [0], [1], [0, 0, 1, 1], [], []>} : vector<16x32xf32>, vector<32x8xf32>, vector<16x8xf32> -> vector<16x8xf32>
    %c1_262 = arith.constant 1 : index
    %c1_263 = arith.constant 1 : index
    %c2_264 = arith.constant 2 : index
    %c0_265 = arith.constant 0 : index
    %c0_266 = arith.constant 0 : index
    %331 = vector.load %arg3[%c1_262, %c1_263, %c2_264, %c0_265, %c0_266] : memref<2x2x4x1x8xf32, #tpu.memory_space<vmem>>, vector<1x1x1x1x8xf32>
    %332 = vector.shape_cast %331 : vector<1x1x1x1x8xf32> to vector<1x8xf32>
    %333 = vector.broadcast %332 : vector<1x8xf32> to vector<16x8xf32>
    %334 = arith.addf %330, %333 : vector<16x8xf32>
    %c1_267 = arith.constant 1 : index
    %c2_268 = arith.constant 2 : index
    %c0_269 = arith.constant 0 : index
    %c0_270 = arith.constant 0 : index
    %335 = vector.load %arg4[%c1_267, %c2_268, %c0_269, %c0_270] : memref<2x4x32x32xf32, #tpu.memory_space<vmem>>, vector<1x1x32x32xf32>
    %336 = vector.shape_cast %335 : vector<1x1x32x32xf32> to vector<32x32xf32>
    %cst_271 = arith.constant dense<0.000000e+00> : vector<16x32xf32>
    %337 = tpu.matmul %251, %336, %cst_271 {dimension_numbers = #tpu.dot_dimension_numbers<[1], [0], [0], [1], [0, 0, 1, 1], [], []>} : vector<16x32xf32>, vector<32x32xf32>, vector<16x32xf32> -> vector<16x32xf32>
    %cst_272 = arith.constant dense<0.000000e+00> : vector<16x16xf32>
    %338 = tpu.matmul %327, %334, %cst_272 {dimension_numbers = #tpu.dot_dimension_numbers<[1], [1], [0], [0], [0, 0, 1, 0], [], []>} : vector<16x8xf32>, vector<16x8xf32>, vector<16x16xf32> -> vector<16x16xf32>
    %cst_273 = arith.constant 0.353553385 : f32
    %339 = vector.broadcast %cst_273 : f32 to vector<16x16xf32>
    %340 = arith.mulf %338, %339 : vector<16x16xf32>
    %341 = arith.addf %340, %20 : vector<16x16xf32>
    %cst_274 = arith.constant dense<0xFF800000> : vector<16xf32>
    %342 = vector.multi_reduction <maximumf>, %341, %cst_274 [1] : vector<16x16xf32> to vector<16xf32>
    %343 = vector.shape_cast %342 : vector<16xf32> to vector<16x1xf32>
    %344 = vector.broadcast %343 : vector<16x1xf32> to vector<16x16xf32>
    %345 = arith.subf %341, %344 : vector<16x16xf32>
    %346 = math.exp %345 : vector<16x16xf32>
    %cst_275 = arith.constant dense<0.000000e+00> : vector<16xf32>
    %347 = vector.multi_reduction <add>, %346, %cst_275 [1] : vector<16x16xf32> to vector<16xf32>
    %348 = vector.shape_cast %347 : vector<16xf32> to vector<16x1xf32>
    %349 = tpu.reciprocal %348 {approx = true} : vector<16x1xf32> -> vector<16x1xf32>
    %350 = vector.broadcast %349 : vector<16x1xf32> to vector<16x16xf32>
    %351 = arith.mulf %346, %350 : vector<16x16xf32>
    %cst_276 = arith.constant dense<0.000000e+00> : vector<16x32xf32>
    %352 = tpu.matmul %351, %337, %cst_276 {dimension_numbers = #tpu.dot_dimension_numbers<[1], [0], [0], [1], [0, 0, 1, 1], [], []>} : vector<16x16xf32>, vector<16x32xf32>, vector<16x32xf32> -> vector<16x32xf32>
    %353 = arith.addf %320, %352 : vector<16x32xf32>
    %c1_277 = arith.constant 1 : index
    %c0_278 = arith.constant 0 : index
    %c3_279 = arith.constant 3 : index
    %c0_280 = arith.constant 0 : index
    %c0_281 = arith.constant 0 : index
    %354 = vector.load %arg2[%c1_277, %c0_278, %c3_279, %c0_280, %c0_281] : memref<2x2x4x32x8xf32, #tpu.memory_space<vmem>>, vector<1x1x1x32x8xf32>
    %355 = vector.shape_cast %354 : vector<1x1x1x32x8xf32> to vector<32x8xf32>
    %cst_282 = arith.constant dense<0.000000e+00> : vector<16x8xf32>
    %356 = tpu.matmul %251, %355, %cst_282 {dimension_numbers = #tpu.dot_dimension_numbers<[1], [0], [0], [1], [0, 0, 1, 1], [], []>} : vector<16x32xf32>, vector<32x8xf32>, vector<16x8xf32> -> vector<16x8xf32>
    %c1_283 = arith.constant 1 : index
    %c0_284 = arith.constant 0 : index
    %c3_285 = arith.constant 3 : index
    %c0_286 = arith.constant 0 : index
    %c0_287 = arith.constant 0 : index
    %357 = vector.load %arg3[%c1_283, %c0_284, %c3_285, %c0_286, %c0_287] : memref<2x2x4x1x8xf32, #tpu.memory_space<vmem>>, vector<1x1x1x1x8xf32>
    %358 = vector.shape_cast %357 : vector<1x1x1x1x8xf32> to vector<1x8xf32>
    %359 = vector.broadcast %358 : vector<1x8xf32> to vector<16x8xf32>
    %360 = arith.addf %356, %359 : vector<16x8xf32>
    %c1_288 = arith.constant 1 : index
    %c1_289 = arith.constant 1 : index
    %c3_290 = arith.constant 3 : index
    %c0_291 = arith.constant 0 : index
    %c0_292 = arith.constant 0 : index
    %361 = vector.load %arg2[%c1_288, %c1_289, %c3_290, %c0_291, %c0_292] : memref<2x2x4x32x8xf32, #tpu.memory_space<vmem>>, vector<1x1x1x32x8xf32>
    %362 = vector.shape_cast %361 : vector<1x1x1x32x8xf32> to vector<32x8xf32>
    %cst_293 = arith.constant dense<0.000000e+00> : vector<16x8xf32>
    %363 = tpu.matmul %251, %362, %cst_293 {dimension_numbers = #tpu.dot_dimension_numbers<[1], [0], [0], [1], [0, 0, 1, 1], [], []>} : vector<16x32xf32>, vector<32x8xf32>, vector<16x8xf32> -> vector<16x8xf32>
    %c1_294 = arith.constant 1 : index
    %c1_295 = arith.constant 1 : index
    %c3_296 = arith.constant 3 : index
    %c0_297 = arith.constant 0 : index
    %c0_298 = arith.constant 0 : index
    %364 = vector.load %arg3[%c1_294, %c1_295, %c3_296, %c0_297, %c0_298] : memref<2x2x4x1x8xf32, #tpu.memory_space<vmem>>, vector<1x1x1x1x8xf32>
    %365 = vector.shape_cast %364 : vector<1x1x1x1x8xf32> to vector<1x8xf32>
    %366 = vector.broadcast %365 : vector<1x8xf32> to vector<16x8xf32>
    %367 = arith.addf %363, %366 : vector<16x8xf32>
    %c1_299 = arith.constant 1 : index
    %c3_300 = arith.constant 3 : index
    %c0_301 = arith.constant 0 : index
    %c0_302 = arith.constant 0 : index
    %368 = vector.load %arg4[%c1_299, %c3_300, %c0_301, %c0_302] : memref<2x4x32x32xf32, #tpu.memory_space<vmem>>, vector<1x1x32x32xf32>
    %369 = vector.shape_cast %368 : vector<1x1x32x32xf32> to vector<32x32xf32>
    %cst_303 = arith.constant dense<0.000000e+00> : vector<16x32xf32>
    %370 = tpu.matmul %251, %369, %cst_303 {dimension_numbers = #tpu.dot_dimension_numbers<[1], [0], [0], [1], [0, 0, 1, 1], [], []>} : vector<16x32xf32>, vector<32x32xf32>, vector<16x32xf32> -> vector<16x32xf32>
    %cst_304 = arith.constant dense<0.000000e+00> : vector<16x16xf32>
    %371 = tpu.matmul %360, %367, %cst_304 {dimension_numbers = #tpu.dot_dimension_numbers<[1], [1], [0], [0], [0, 0, 1, 0], [], []>} : vector<16x8xf32>, vector<16x8xf32>, vector<16x16xf32> -> vector<16x16xf32>
    %cst_305 = arith.constant 0.353553385 : f32
    %372 = vector.broadcast %cst_305 : f32 to vector<16x16xf32>
    %373 = arith.mulf %371, %372 : vector<16x16xf32>
    %374 = arith.addf %373, %20 : vector<16x16xf32>
    %cst_306 = arith.constant dense<0xFF800000> : vector<16xf32>
    %375 = vector.multi_reduction <maximumf>, %374, %cst_306 [1] : vector<16x16xf32> to vector<16xf32>
    %376 = vector.shape_cast %375 : vector<16xf32> to vector<16x1xf32>
    %377 = vector.broadcast %376 : vector<16x1xf32> to vector<16x16xf32>
    %378 = arith.subf %374, %377 : vector<16x16xf32>
    %379 = math.exp %378 : vector<16x16xf32>
    %cst_307 = arith.constant dense<0.000000e+00> : vector<16xf32>
    %380 = vector.multi_reduction <add>, %379, %cst_307 [1] : vector<16x16xf32> to vector<16xf32>
    %381 = vector.shape_cast %380 : vector<16xf32> to vector<16x1xf32>
    %382 = tpu.reciprocal %381 {approx = true} : vector<16x1xf32> -> vector<16x1xf32>
    %383 = vector.broadcast %382 : vector<16x1xf32> to vector<16x16xf32>
    %384 = arith.mulf %379, %383 : vector<16x16xf32>
    %cst_308 = arith.constant dense<0.000000e+00> : vector<16x32xf32>
    %385 = tpu.matmul %384, %370, %cst_308 {dimension_numbers = #tpu.dot_dimension_numbers<[1], [0], [0], [1], [0, 0, 1, 1], [], []>} : vector<16x16xf32>, vector<16x32xf32>, vector<16x32xf32> -> vector<16x32xf32>
    %386 = arith.addf %353, %385 : vector<16x32xf32>
    %387 = arith.addf %386, %251 : vector<16x32xf32>
    %c9 = arith.constant 9 : index
    %c0_309 = arith.constant 0 : index
    %c0_310 = arith.constant 0 : index
    %388 = vector.load %arg8[%c9, %c0_309, %c0_310] : memref<14x1x32xf32, #tpu.memory_space<vmem>>, vector<1x1x32xf32>
    %389 = vector.shape_cast %388 : vector<1x1x32xf32> to vector<1x32xf32>
    %c10 = arith.constant 10 : index
    %c0_311 = arith.constant 0 : index
    %c0_312 = arith.constant 0 : index
    %390 = vector.load %arg8[%c10, %c0_311, %c0_312] : memref<14x1x32xf32, #tpu.memory_space<vmem>>, vector<1x1x32xf32>
    %391 = vector.shape_cast %390 : vector<1x1x32xf32> to vector<1x32xf32>
    %cst_313 = arith.constant dense<0.000000e+00> : vector<16xf32>
    %392 = vector.multi_reduction <add>, %387, %cst_313 [1] : vector<16x32xf32> to vector<16xf32>
    %393 = vector.shape_cast %392 : vector<16xf32> to vector<16x1xf32>
    %cst_314 = arith.constant 3.200000e+01 : f32
    %394 = vector.broadcast %cst_314 : f32 to vector<16x1xf32>
    %395 = arith.divf %393, %394 : vector<16x1xf32>
    %396 = vector.broadcast %395 : vector<16x1xf32> to vector<16x32xf32>
    %397 = arith.subf %387, %396 : vector<16x32xf32>
    %398 = arith.mulf %397, %397 : vector<16x32xf32>
    %cst_315 = arith.constant dense<0.000000e+00> : vector<16xf32>
    %399 = vector.multi_reduction <add>, %398, %cst_315 [1] : vector<16x32xf32> to vector<16xf32>
    %400 = vector.shape_cast %399 : vector<16xf32> to vector<16x1xf32>
    %cst_316 = arith.constant 3.200000e+01 : f32
    %401 = vector.broadcast %cst_316 : f32 to vector<16x1xf32>
    %402 = arith.divf %400, %401 : vector<16x1xf32>
    %403 = vector.broadcast %395 : vector<16x1xf32> to vector<16x32xf32>
    %404 = arith.subf %387, %403 : vector<16x32xf32>
    %cst_317 = arith.constant 9.99999974E-6 : f32
    %405 = vector.broadcast %cst_317 : f32 to vector<16x1xf32>
    %406 = arith.addf %402, %405 : vector<16x1xf32>
    %407 = math.rsqrt %406 : vector<16x1xf32>
    %408 = vector.broadcast %407 : vector<16x1xf32> to vector<16x32xf32>
    %409 = arith.mulf %404, %408 : vector<16x32xf32>
    %410 = vector.broadcast %389 : vector<1x32xf32> to vector<16x32xf32>
    %411 = arith.mulf %409, %410 : vector<16x32xf32>
    %412 = vector.broadcast %391 : vector<1x32xf32> to vector<16x32xf32>
    %413 = arith.addf %411, %412 : vector<16x32xf32>
    %c1_318 = arith.constant 1 : index
    %c0_319 = arith.constant 0 : index
    %c0_320 = arith.constant 0 : index
    %414 = vector.load %arg5[%c1_318, %c0_319, %c0_320] : memref<2x32x64xf32, #tpu.memory_space<vmem>>, vector<1x32x64xf32>
    %415 = vector.shape_cast %414 : vector<1x32x64xf32> to vector<32x64xf32>
    %cst_321 = arith.constant dense<0.000000e+00> : vector<16x64xf32>
    %416 = tpu.matmul %413, %415, %cst_321 {dimension_numbers = #tpu.dot_dimension_numbers<[1], [0], [0], [1], [0, 0, 1, 1], [], []>} : vector<16x32xf32>, vector<32x64xf32>, vector<16x64xf32> -> vector<16x64xf32>
    %c1_322 = arith.constant 1 : index
    %c0_323 = arith.constant 0 : index
    %c0_324 = arith.constant 0 : index
    %417 = vector.load %arg6[%c1_322, %c0_323, %c0_324] : memref<2x1x64xf32, #tpu.memory_space<vmem>>, vector<1x1x64xf32>
    %418 = vector.shape_cast %417 : vector<1x1x64xf32> to vector<1x64xf32>
    %419 = vector.broadcast %418 : vector<1x64xf32> to vector<16x64xf32>
    %420 = arith.addf %416, %419 : vector<16x64xf32>
    %cst_325 = arith.constant 0.000000e+00 : f32
    %421 = vector.broadcast %cst_325 : f32 to vector<16x64xf32>
    %422 = arith.maximumf %420, %421 : vector<16x64xf32>
    %c1_326 = arith.constant 1 : index
    %c0_327 = arith.constant 0 : index
    %c0_328 = arith.constant 0 : index
    %423 = vector.load %arg7[%c1_326, %c0_327, %c0_328] : memref<2x64x32xf32, #tpu.memory_space<vmem>>, vector<1x64x32xf32>
    %424 = vector.shape_cast %423 : vector<1x64x32xf32> to vector<64x32xf32>
    %cst_329 = arith.constant dense<0.000000e+00> : vector<16x32xf32>
    %425 = tpu.matmul %422, %424, %cst_329 {dimension_numbers = #tpu.dot_dimension_numbers<[1], [0], [0], [1], [0, 0, 1, 1], [], []>} : vector<16x64xf32>, vector<64x32xf32>, vector<16x32xf32> -> vector<16x32xf32>
    %c11 = arith.constant 11 : index
    %c0_330 = arith.constant 0 : index
    %c0_331 = arith.constant 0 : index
    %426 = vector.load %arg8[%c11, %c0_330, %c0_331] : memref<14x1x32xf32, #tpu.memory_space<vmem>>, vector<1x1x32xf32>
    %427 = vector.shape_cast %426 : vector<1x1x32xf32> to vector<1x32xf32>
    %428 = vector.broadcast %427 : vector<1x32xf32> to vector<16x32xf32>
    %429 = arith.addf %425, %428 : vector<16x32xf32>
    %430 = arith.addf %429, %413 : vector<16x32xf32>
    %c12 = arith.constant 12 : index
    %c0_332 = arith.constant 0 : index
    %c0_333 = arith.constant 0 : index
    %431 = vector.load %arg8[%c12, %c0_332, %c0_333] : memref<14x1x32xf32, #tpu.memory_space<vmem>>, vector<1x1x32xf32>
    %432 = vector.shape_cast %431 : vector<1x1x32xf32> to vector<1x32xf32>
    %c13 = arith.constant 13 : index
    %c0_334 = arith.constant 0 : index
    %c0_335 = arith.constant 0 : index
    %433 = vector.load %arg8[%c13, %c0_334, %c0_335] : memref<14x1x32xf32, #tpu.memory_space<vmem>>, vector<1x1x32xf32>
    %434 = vector.shape_cast %433 : vector<1x1x32xf32> to vector<1x32xf32>
    %cst_336 = arith.constant dense<0.000000e+00> : vector<16xf32>
    %435 = vector.multi_reduction <add>, %430, %cst_336 [1] : vector<16x32xf32> to vector<16xf32>
    %436 = vector.shape_cast %435 : vector<16xf32> to vector<16x1xf32>
    %cst_337 = arith.constant 3.200000e+01 : f32
    %437 = vector.broadcast %cst_337 : f32 to vector<16x1xf32>
    %438 = arith.divf %436, %437 : vector<16x1xf32>
    %439 = vector.broadcast %438 : vector<16x1xf32> to vector<16x32xf32>
    %440 = arith.subf %430, %439 : vector<16x32xf32>
    %441 = arith.mulf %440, %440 : vector<16x32xf32>
    %cst_338 = arith.constant dense<0.000000e+00> : vector<16xf32>
    %442 = vector.multi_reduction <add>, %441, %cst_338 [1] : vector<16x32xf32> to vector<16xf32>
    %443 = vector.shape_cast %442 : vector<16xf32> to vector<16x1xf32>
    %cst_339 = arith.constant 3.200000e+01 : f32
    %444 = vector.broadcast %cst_339 : f32 to vector<16x1xf32>
    %445 = arith.divf %443, %444 : vector<16x1xf32>
    %446 = vector.broadcast %438 : vector<16x1xf32> to vector<16x32xf32>
    %447 = arith.subf %430, %446 : vector<16x32xf32>
    %cst_340 = arith.constant 9.99999974E-6 : f32
    %448 = vector.broadcast %cst_340 : f32 to vector<16x1xf32>
    %449 = arith.addf %445, %448 : vector<16x1xf32>
    %450 = math.rsqrt %449 : vector<16x1xf32>
    %451 = vector.broadcast %450 : vector<16x1xf32> to vector<16x32xf32>
    %452 = arith.mulf %447, %451 : vector<16x32xf32>
    %453 = vector.broadcast %432 : vector<1x32xf32> to vector<16x32xf32>
    %454 = arith.mulf %452, %453 : vector<16x32xf32>
    %455 = vector.broadcast %434 : vector<1x32xf32> to vector<16x32xf32>
    %456 = arith.addf %454, %455 : vector<16x32xf32>
    %c0_341 = arith.constant 0 : index
    %c0_342 = arith.constant 0 : index
    %457 = vector.load %arg9[%c0_341, %c0_342] : memref<16x32xf32, #tpu.memory_space<vmem>>, vector<16x32xf32>
    tpu.vector_store %arg9[%c0_341, %c0_342], %456 {strides = array<i32>} : memref<16x32xf32, #tpu.memory_space<vmem>>, vector<16x32xf32>,
    return
  }
}

</mosaic_0001>

<bundles_post_ra>
// kernel: tpu_custom_call.1
= control target key start
LH: loop header
LB: loop body
LE: loop exit
PB: predicated region body
PF: predicated region fallthrough
CT: control target
= control target key end

     0   :  { %vm63_vm0 = vcmask 261120   ;;  %s3252_s0 = inlined_call_operand.vmem [shape: f32[16,32], index: 0, kind: input, shape index: {}]   ;;  %s3253_s1 = inlined_call_operand.vmem [shape: f32[1,16], index: 1, kind: input, shape index: {}]   ;;  %s3254_s2 = inlined_call_operand.vmem [shape: f32[2,2,4,32,8], index: 2, kind: input, shape index: {}]   ;;  %s3255_s3 = inlined_call_operand.vmem [shape: f32[2,2,4,1,8], index: 3, kind: input, shape index: {}]   ;;  %s3256_s4 = inlined_call_operand.vmem [shape: f32[2,4,32,32], index: 4, kind: input, shape index: {}]   ;;  %s3257_s5 = inlined_call_operand.vmem [shape: f32[2,32,64], index: 5, kind: input, shape index: {}]   ;;  %s3258_s6 = inlined_call_operand.vmem [shape: f32[2,1,64], index: 6, kind: input, shape index: {}]   ;;  %s3259_s7 = inlined_call_operand.vmem [shape: f32[2,64,32], index: 7, kind: input, shape index: {}]   ;;  %s3260_s8 = inlined_call_operand.vmem [shape: f32[14,1,32], index: 8, kind: input, shape index: {}]   ;;  %s3261_s9 = inlined_call_operand.hbm [shape: f32[16,32], index: 9, kind: output, shape index: {}]  }
   0x1   :  { %v33_v0 = vld [vmem:[%s3252_s0] sm:$0xff]  ;;  %v34_v1 = vld [vmem:[%s3252_s0 + $0x8] sm:$0xff] }
   0x2   :  { %v64_v2 = vsel %vm63_vm0, %v33_v0, 0.0  ;;  %v67_v3 = vsel %vm63_vm0, %v34_v1, 0.0 }
   0x3   :  { %65 = vadd.xlane.f32.xlu0 %v64_v2 }
   0xb   :  { %68 = vadd.xlane.f32.xlu0 %v67_v3 }
   0xc   :  { %14 = vsyncpa [#allocation3], 0  ;;  %v2438_v4 = vmov 32.0   ;;  %v128_v21 = vld [vmem:[%s3254_s2 + $0x18] sm:$0xff]  ;;  %v127_v24 = vld [vmem:[%s3254_s2 + $0x10] sm:$0xff]  ;;  %vm222_vm8 = vcmask 64512  }
   0xd   :  { %2326 = vrcp.f32 %v2438_v4  ;;  %v2062_v22 = vld [vmem:[%s3254_s2 + $0x98] sm:$0xff]  ;;  %151 = vmatpush.msra.mxu0 %v128_v21  ;;  %v2061_v25 = vld [vmem:[%s3254_s2 + $0x90] sm:$0xff]  ;;  %v126_v27 = vld [vmem:[%s3254_s2 + $0x8] sm:$0xff]  ;;  %vm262_vm10 = vcmask 130048   ;;  %s2439_s13 = smov [#allocation2]   ;;  %s2044_s16 = sshll.u32 %s3261_s9, 4  ;;  %s2045_s16 = int_to_ptr.hbm [resolvable:$true] %s2044_s16 }
   0xe   :  { %v198_v23 = vld [vmem:[%s3256_s4 + $0x18] sm:$0xff]  ;;  %184 = vmatpush.msra.mxu1 %v2062_v22  ;;  %v197_v26 = vld [vmem:[%s3256_s4 + $0x10] sm:$0xff]  ;;  %v2060_v28 = vld [vmem:[%s3254_s2 + $0x88] sm:$0xff]  ;;  %s2042_s14 = sshll.u32 %s2439_s13, 4  ;;  %s2441_s17 = smov 8   ;;  %s2043_s14 = int_to_ptr.vmem [resolvable:$true] %s2042_s14 }
   0xf   :  { %211 = vmatpush.msra.mxu2 %v198_v23  ;;  %152 = vmatpush.msra.mxu0 %v127_v24  ;;  %v196_v29 = vld [vmem:[%s3256_s4 + $0x8] sm:$0xff]  ;;  %v125_v30 = vld [vmem:[%s3254_s2] sm:$0xff]  ;;  %v2078_v36 = vld [vmem:[%s3254_s2 + $0x38] sm:$0xff] }
  0x10   :  { %185 = vmatpush.msra.mxu1 %v2061_v25  ;;  %v2059_v31 = vld [vmem:[%s3254_s2 + $0x80] sm:$0xff]  ;;  %v2085_v37 = vld [vmem:[%s3254_s2 + $0xb8] sm:$0xff]  ;;  %v2077_v38 = vld [vmem:[%s3254_s2 + $0x30] sm:$0xff] }
  0x11   :  { %212 = vmatpush.msra.mxu2 %v197_v26  ;;  %153 = vmatpush.msra.mxu0 %v126_v27  ;;  %v195_v32 = vld [vmem:[%s3256_s4] sm:$0xff]  ;;  %v2084_v39 = vld [vmem:[%s3254_s2 + $0xb0] sm:$0xff]  ;;  %v2076_v41 = vld [vmem:[%s3254_s2 + $0x28] sm:$0xff] }
  0x12   :  { %186 = vmatpush.msra.mxu1 %v2060_v28  ;;  %v2083_v42 = vld [vmem:[%s3254_s2 + $0xa8] sm:$0xff]  ;;  %v2075_v44 = vld [vmem:[%s3254_s2 + $0x20] sm:$0xff]  ;;  %v2103_v3 = vld [vmem:[%s3254_s2 + $0x50] sm:$0xff] }
  0x13   :  { %v2327_v5 = vpop.eup %2326  ;;  %213 = vmatpush.msra.mxu2 %v196_v29  ;;  %154 = vmatpush.msra.mxu0 %v125_v30  ;;  %v2082_v45 = vld [vmem:[%s3254_s2 + $0xa0] sm:$0xff]  ;;  %v2091_v21 = vld [vmem:[%s3256_s4 + $0x30] sm:$0xff]  ;;  %v2090_v22 = vld [vmem:[%s3256_s4 + $0x28] sm:$0xff] }
  0x14   :  { %v71_v6 = vmul.f32 32.0, %v2327_v5  ;;  %vm75_vm1 = vweird.f32 %v2327_v5  ;;  %187 = vmatpush.msra.mxu1 %v2059_v31  ;;  %v2293_v55 = vld [vmem:[%s3260_s8] ss:$0 sm:$0xff]  ;;  %v2294_v58 = vld [vmem:[%s3260_s8 + $0x1] ss:$0 sm:$0xff]  ;;  %v2111_v25 = vld [vmem:[%s3254_s2 + $0xd8] sm:$0xff] }
  0x15   :  { %214 = vmatpush.msra.mxu2 %v195_v32  ;;  %v2089_v23 = vld [vmem:[%s3256_s4 + $0x20] sm:$0xff]  ;;  %v2110_v28 = vld [vmem:[%s3254_s2 + $0xd0] sm:$0xff]  ;;  %v2109_v29 = vld [vmem:[%s3254_s2 + $0xc8] sm:$0xff] }
  0x16   :  { %v72_v7 = vsub.f32 1.0, %v71_v6  ;;  %341 = vmatpush.msrb.mxu1 %v2078_v36  ;;  %v2108_v30 = vld [vmem:[%s3254_s2 + $0xc0] sm:$0xff] }
  0x17   :  { %374 = vmatpush.msrb.mxu2 %v2085_v37  ;;  %v2298_v31 = vld [vmem:[%s3255_s3 + $0x5] ss:$0 sm:$0xff]  ;;  %v2128_v37 = vld [vmem:[%s3254_s2 + $0x68] sm:$0xff] }
  0x18   :  { %v73_v8 = vmul.f32 %v2327_v5, %v72_v7  ;;  %342 = vmatpush.msrb.mxu1 %v2077_v38  ;;  %v2127_v38 = vld [vmem:[%s3254_s2 + $0x60] sm:$0xff] }
  0x19   :  { %375 = vmatpush.msrb.mxu2 %v2084_v39  ;;  %v35_v39 = vlaneseq }
  0x1a   :  { %v74_v9 = vadd.f32 %v2327_v5, %v73_v8  ;;  %343 = vmatpush.msrb.mxu1 %v2076_v41  ;;  %v2101_v8 = vld [vmem:[%s3254_s2 + $0x40] sm:$0xff] }
  0x1b   :  { %376 = vmatpush.msrb.mxu2 %v2083_v42  ;;  %v41_v41 = vand.u32 127, %v35_v39 }
  0x1c   :  { %v2500_v10 = vsel %vm75_vm1, %v2327_v5, %v74_v9  ;;  %344 = vmatpush.msrb.mxu1 %v2075_v44  ;;  %v2102_v5 = vld [vmem:[%s3254_s2 + $0x48] sm:$0xff] }
  0x1d   :  { %377 = vmatpush.msrb.mxu2 %v2082_v45 }
  0x76   :  { %v66_v11 = vpop.xlane.xlu0 %65 }
  0x77   :  { %v77_v12 = vmul.f32 %v2500_v10, %v66_v11  ;;  %v2296_v11 = vld [vmem:[%s3255_s3 + $0x4] ss:$0 sm:$0xff] }
  0x79   :  { %v2503_v13 = vsub.f32 %v33_v0, %v77_v12 }
  0x7b   :  { %v81_v14 = vmul.f32 %v2503_v13, %v2503_v13 }
  0x7d   :  { %v83_v15 = vsel %vm63_vm0, %v81_v14, 0.0 }
  0x7e   :  { %84 = vadd.xlane.f32.xlu1 %v83_v15  ;;  %v69_v16 = vpop.xlane.xlu0 %68 }
  0x7f   :  { %v78_v17 = vmul.f32 %v2500_v10, %v69_v16  ;;  %v2295_v16 = vld [vmem:[%s3255_s3] ss:$0 sm:$0xff] }
  0x81   :  { %v2509_v18 = vsub.f32 %v34_v1, %v78_v17  ;;  %v2104_v1 = vld [vmem:[%s3254_s2 + $0x58] sm:$0xff] }
  0x83   :  { %v82_v19 = vmul.f32 %v2509_v18, %v2509_v18 }
  0x85   :  { %v86_v20 = vsel %vm63_vm0, %v82_v19, 0.0 }
  0x86   :  { %87 = vadd.xlane.f32.xlu1 %v86_v20 }
  0xf1   :  { %v85_v33 = vpop.xlane.xlu1 %84 }
  0xf2   :  { %v89_v34 = vmul.f32 %v85_v33, %v2500_v10 }
  0xf4   :  { %v91_v35 = vadd.f32 1e-05, %v89_v34  ;;  %v2130_v34 = vld [vmem:[%s3254_s2 + $0x78] sm:$0xff] }
  0xf6   :  { %2328 = vrsqrt.f32 %v91_v35  ;;  %vm99_vm3 = vweird.f32 %v91_v35 }
  0xf9   :  { %v88_v40 = vpop.xlane.xlu1 %87 }
  0xfa   :  { %v90_v43 = vmul.f32 %v88_v40, %v2500_v10  ;;  %v36_v40 = vshrl.u32 %v35_v39, 7  ;;  %v2134_v39 = vld [vmem:[%s3254_s2 + $0xe0] sm:$0xff] }
  0xfc   :  { %v2329_v46 = vpop.eup %2328  ;;  %v92_v47 = vadd.f32 1e-05, %v90_v43  ;;  %v38_v42 = vcvt.s32.f32 %v36_v40  ;;  %v42_v43 = vcvt.s32.f32 %v41_v41 }
  0xfd   :  { %v94_v48 = vmul.f32 %v2329_v46, %v91_v35  ;;  %vm100_vm2 = vweird.f32 %v2329_v46  ;;  %v2129_v35 = vld [vmem:[%s3254_s2 + $0x70] sm:$0xff] }
  0xfe   :  { %2330 = vrsqrt.f32 %v92_v47  ;;  %vm101_vm4 = vmor %vm99_vm3, %vm100_vm2  ;;  %vm109_vm6 = vweird.f32 %v92_v47  ;;  %v43_v44 = vadd.f32 0.5, %v38_v42  ;;  %v49_v45 = vadd.f32 0.5, %v42_v43 }
  0xff   :  { %v95_v49 = vmul.f32 %v2329_v46, %v94_v48  ;;  %vm989_vm3 = vcmask 523264  }
 0x100   :  { %v50_v48 = vmul.f32 0.125, %v49_v45 }
 0x101   :  { %v96_v50 = vmul.f32 0.5, %v95_v49 }
 0x103   :  { %v97_v51 = vsub.f32 1.5, %v96_v50 }
 0x104   :  { %v2331_v52 = vpop.eup %2330 }
 0x105   :  { %v98_v53 = vmul.f32 %v2329_v46, %v97_v51  ;;  %v104_v54 = vmul.f32 %v2331_v52, %v92_v47  ;;  %vm110_vm5 = vweird.f32 %v2331_v52  ;;  %v45_v47 = vmul.f32 0.125, %v43_v44 }
 0x106   :  { %vm111_vm7 = vmor %vm109_vm6, %vm110_vm5  ;;  %v51_v51 = vfloor.f32 %v50_v48 }
 0x107   :  { %v102_v56 = vsel %vm101_vm4, %v2329_v46, %v98_v53  ;;  %v105_v57 = vmul.f32 %v2331_v52, %v104_v54  ;;  %v37_v46 = vadd.s32 8, %v36_v40  ;;  %v47_v50 = vfloor.f32 %v45_v47  ;;  %v2300_v53 = vld [vmem:[%s3253_s1] ss:$0 sm:$0xff] }
 0x108   :  { %v113_v59 = vmul.f32 %v102_v56, %v2503_v13 }
 0x109   :  { %v106_v60 = vmul.f32 0.5, %v105_v57  ;;  %v39_v49 = vcvt.s32.f32 %v37_v46  ;;  %vm52_vm9 = vcmp.eq.f32.partialorder %v47_v50, %v51_v51 }
 0x10a   :  { %v118_v61 = vmul.f32 %v2293_v55, %v113_v59  ;;  %v2690_v56 = vsel %vm52_vm9, %v2300_v53, -1e+09 }
 0x10b   :  { %v107_v62 = vsub.f32 1.5, %v106_v60 }
 0x10c   :  { %v2583_v63 = vadd.f32 %v2294_v58, %v118_v61 }
 0x10d   :  { %v108_v0 = vmul.f32 %v2331_v52, %v107_v62 }
 0x10e   :  { %2057 = vmatmul.msk.f32.vlgmr.msra.gmra.mxu0 %vm63_vm0, %v2583_v63  ;;  %2064 = vmatmul.msk.f32.vlgmr.msra.gmra.mxu1 %vm63_vm0, %v2583_v63 }
 0x10f   :  { %v112_v2 = vsel %vm111_vm7, %v2331_v52, %v108_v0  ;;  %2066 = vmatmul.msk.f32.vlgmr.msra.gmra.mxu2 %vm63_vm0, %v2583_v63  ;;  %v44_v52 = vadd.f32 0.5, %v39_v49 }
 0x110   :  { %v114_v4 = vmul.f32 %v112_v2, %v2509_v18  ;;  %527 = vmatpush.msra.mxu2 %v2104_v1  ;;  %v2092_v18 = vld [vmem:[%s3256_s4 + $0x38] sm:$0xff] }
 0x111   :  { %v46_v54 = vmul.f32 0.125, %v44_v52 }
 0x112   :  { %v119_v6 = vmul.f32 %v2293_v55, %v114_v4  ;;  %528 = vmatpush.msra.mxu2 %v2103_v3 }
 0x114   :  { %v2601_v7 = vadd.f32 %v2294_v58, %v119_v6  ;;  %529 = vmatpush.msra.mxu2 %v2102_v5  ;;  %v48_v58 = vfloor.f32 %v46_v54  ;;  %v2301_v6 = vld [vmem:[%s3255_s3 + $0x6] ss:$0 sm:$0xff]  ;;  %v2304_v54 = vld [vmem:[%s3255_s3 + $0x7] ss:$0 sm:$0xff] }
 0x116   :  { %2058 = vmatmul.msk.f32.gmra.mxu0 %vm63_vm0, %v2601_v7  ;;  %2065 = vmatmul.msk.f32.gmra.mxu1 %vm63_vm0, %v2601_v7  ;;  %vm53_vm11 = vcmp.eq.f32.partialorder %v48_v58, %v51_v51 }
 0x117   :  { %2067 = vmatmul.msk.f32.gmra.mxu2 %vm63_vm0, %v2601_v7  ;;  %v2694_v62 = vsel %vm53_vm11, %v2300_v53, -1e+09 }
 0x118   :  { %530 = vmatpush.msra.mxu2 %v2101_v8 }
 0x11e   :  { %2080 = vmatmul.msk.f32.vlgmr.msrb.gmra.mxu1 %vm63_vm0, %v2583_v63 }
 0x11f   :  { %2087 = vmatmul.msk.f32.vlgmr.msrb.gmra.mxu2 %vm63_vm0, %v2583_v63 }
 0x126   :  { %2081 = vmatmul.msk.f32.gmra.mxu1 %vm63_vm0, %v2601_v7 }
 0x127   :  { %2088 = vmatmul.msk.f32.gmra.mxu2 %vm63_vm0, %v2601_v7 }
 0x12f   :  { %2106 = vmatmul.msk.f32.vlgmr.msra.gmra.mxu2 %vm63_vm0, %v2583_v63 }
 0x137   :  { %2107 = vmatmul.msk.f32.gmra.mxu2 %vm63_vm0, %v2601_v7 }
 0x18b   :  { %v189_v9 = vpop.f32.mrf.mxu1  ;;  %v156_v15 = vpop.f32.mrf.mxu0 }
 0x18c   :  { %v190_v17 = vadd.f32 %v2296_v11, %v189_v9  ;;  %v157_v20 = vadd.f32 %v2295_v16, %v156_v15 }
 0x192   :  { %v216_v12 = vpop.f32.mrf.mxu2 }
 0x193   :  { %v192_v13 = vpop.f32.mrf.mxu1  ;;  %v159_v24 = vpop.f32.mrf.mxu0 }
 0x194   :  { %v193_v14 = vadd.f32 %v2296_v11, %v192_v13  ;;  %v160_v27 = vadd.f32 %v2295_v16, %v159_v24 }
 0x196   :  { %2068 = vmatpush.xpose.msk.msra.mxu3 %vm222_vm8, %v193_v14 }
 0x19a   :  { %v219_v19 = vpop.f32.mrf.mxu2  ;;  %2069 = vmatpush.xpose.msk.msra.mxu3 %vm222_vm8, %v190_v17 }
 0x19b   :  { %310 = vmatpush.msrb.mxu0 %v219_v19 }
 0x19d   :  { %311 = vmatpush.msrb.mxu0 %v216_v12  ;;  %2070 = vmatmul.msk.f32.vlgmr.msra.gmra.mxu3 %vm222_vm8, %v157_v20 }
 0x19e   :  { %402 = vmatpush.msrb.mxu3 %v2092_v18 }
 0x1a0   :  { %403 = vmatpush.msrb.mxu3 %v2091_v21 }
 0x1a2   :  { %404 = vmatpush.msrb.mxu3 %v2090_v22  ;;  %v379_v26 = vpop.f32.mrf.mxu2 }
 0x1a3   :  { %v380_v36 = vadd.f32 %v2298_v31, %v379_v26  ;;  %v2118_v26 = vld [vmem:[%s3256_s4 + $0x58] sm:$0xff] }
 0x1a4   :  { %405 = vmatpush.msrb.mxu3 %v2089_v23 }
 0x1a5   :  { %2071 = vmatmul.msk.f32.gmra.mxu3 %vm222_vm8, %v160_v27  ;;  %v2117_v27 = vld [vmem:[%s3256_s4 + $0x50] sm:$0xff] }
 0x1a6   :  { %560 = vmatpush.msra.mxu3 %v2111_v25 }
 0x1a8   :  { %561 = vmatpush.msra.mxu3 %v2110_v28  ;;  %v2116_v28 = vld [vmem:[%s3256_s4 + $0x48] sm:$0xff] }
 0x1aa   :  { %562 = vmatpush.msra.mxu3 %v2109_v29  ;;  %v382_v32 = vpop.f32.mrf.mxu2  ;;  %v2115_v29 = vld [vmem:[%s3256_s4 + $0x40] sm:$0xff] }
 0x1ab   :  { %v383_v33 = vadd.f32 %v2298_v31, %v382_v32  ;;  %v346_v32 = vpop.f32.mrf.mxu1 }
 0x1ac   :  { %563 = vmatpush.msra.mxu3 %v2108_v30 }
 0x1ad   :  { %2095 = vmatpush.xpose.msk.msra.mxu0 %vm222_vm8, %v383_v33  ;;  %2093 = vmatmul.msk.f32.vlgmr.msrb.gmra.mxu3 %vm63_vm0, %v2583_v63  ;;  %v2297_v33 = vld [vmem:[%s3255_s3 + $0x1] ss:$0 sm:$0xff] }
 0x1ae   :  { %713 = vmatpush.msrb.mxu3 %v2130_v34  ;;  %v347_v34 = vadd.f32 %v2297_v33, %v346_v32 }
 0x1b0   :  { %714 = vmatpush.msrb.mxu3 %v2129_v35  ;;  %v2137_v35 = vld [vmem:[%s3254_s2 + $0xf8] sm:$0xff] }
 0x1b1   :  { %2096 = vmatpush.xpose.msk.msra.mxu0 %vm222_vm8, %v380_v36  ;;  %v2136_v36 = vld [vmem:[%s3254_s2 + $0xf0] sm:$0xff] }
 0x1b2   :  { %715 = vmatpush.msrb.mxu3 %v2128_v37  ;;  %v2135_v37 = vld [vmem:[%s3254_s2 + $0xe8] sm:$0xff] }
 0x1b4   :  { %716 = vmatpush.msrb.mxu3 %v2127_v38  ;;  %v349_v38 = vpop.f32.mrf.mxu1 }
 0x1b5   :  { %2094 = vmatmul.msk.f32.gmra.mxu3 %vm63_vm0, %v2601_v7  ;;  %v350_v40 = vadd.f32 %v2297_v33, %v349_v38 }
 0x1bd   :  { %2113 = vmatmul.msk.f32.vlgmr.msra.gmra.mxu3 %vm63_vm0, %v2583_v63 }
 0x1c5   :  { %2114 = vmatmul.msk.f32.gmra.mxu3 %vm63_vm0, %v2601_v7 }
 0x1cd   :  { %2132 = vmatmul.msk.f32.vlgmr.msrb.gmra.mxu3 %vm63_vm0, %v2583_v63 }
 0x1d5   :  { %2133 = vmatmul.msk.f32.gmra.mxu3 %vm63_vm0, %v2601_v7 }
 0x220   :  { %v252_v55 = vpop.f32.mrf.mxu3 }
 0x221   :  { %v258_v57 = vmul.f32 0.35355338, %v252_v55 }
 0x223   :  { %v260_v59 = vadd.f32 %v258_v57, %v2690_v56 }
 0x225   :  { %v263_v60 = vsel %vm262_vm10, %v260_v59, -inf }
 0x226   :  { %264 = vmax.xlane.f32.xlu2 %v263_v60 }
 0x228   :  { %v255_v61 = vpop.f32.mrf.mxu3 }
 0x229   :  { %v259_v0 = vmul.f32 0.35355338, %v255_v61 }
 0x22b   :  { %v261_v1 = vadd.f32 %v259_v0, %v2694_v62 }
 0x22d   :  { %v266_v2 = vsel %vm262_vm10, %v261_v1, -inf }
 0x22e   :  { %267 = vmax.xlane.f32.xlu2 %v266_v2 }
 0x230   :  { %v407_v3 = vpop.f32.mrf.mxu3 }
 0x238   :  { %v410_v4 = vpop.f32.mrf.mxu3 }
 0x239   :  { %494 = vmatpush.msra.mxu1 %v410_v4 }
 0x23b   :  { %495 = vmatpush.msra.mxu1 %v407_v3 }
 0x240   :  { %v565_v5 = vpop.f32.mrf.mxu3 }
 0x241   :  { %v566_v11 = vadd.f32 %v2301_v6, %v565_v5 }
 0x248   :  { %v568_v8 = vpop.f32.mrf.mxu3 }
 0x249   :  { %v569_v9 = vadd.f32 %v2301_v6, %v568_v8 }
 0x24b   :  { %2121 = vmatpush.xpose.msk.msrb.mxu1 %vm222_vm8, %v569_v9 }
 0x24f   :  { %2122 = vmatpush.xpose.msk.msrb.mxu1 %vm222_vm8, %v566_v11 }
 0x299   :  { %v265_v12 = vpop.xlane.xlu2 %264 }
 0x29a   :  { %v269_v13 = vsub.f32 %v260_v59, %v265_v12 }
 0x29c   :  { %v271_v14 = vmul.f32 1.442695, %v269_v13  ;;  %v2144_v13 = vld [vmem:[%s3256_s4 + $0x78] sm:$0xff] }
 0x29e   :  { %2332 = vpow2.f32 %v271_v14  ;;  %v2143_v14 = vld [vmem:[%s3256_s4 + $0x70] sm:$0xff] }
 0x2a1   :  { %v268_v15 = vpop.xlane.xlu2 %267 }
 0x2a2   :  { %v270_v16 = vsub.f32 %v261_v1, %v268_v15  ;;  %v2142_v15 = vld [vmem:[%s3256_s4 + $0x68] sm:$0xff] }
 0x2a4   :  { %v2333_v17 = vpop.eup %2332  ;;  %v273_v18 = vmul.f32 1.442695, %v270_v16  ;;  %v2141_v16 = vld [vmem:[%s3256_s4 + $0x60] sm:$0xff] }
 0x2a5   :  { %v275_v19 = vsel %vm262_vm10, %v2333_v17, 0.0 }
 0x2a6   :  { %2334 = vpow2.f32 %v273_v18  ;;  %276 = vadd.xlane.f32.xlu0 %v275_v19  ;;  %v532_v19 = vpop.f32.mrf.mxu2 }
 0x2ac   :  { %v2335_v20 = vpop.eup %2334 }
 0x2ad   :  { %v278_v21 = vsel %vm262_vm10, %v2335_v20, 0.0 }
 0x2ae   :  { %279 = vadd.xlane.f32.xlu1 %v278_v21 }
 0x319   :  { %v277_v22 = vpop.xlane.xlu0 %276 }
 0x31a   :  { %2336 = vrcp.f32 %v277_v22  ;;  %v535_v22 = vpop.f32.mrf.mxu2 }
 0x320   :  { %v2337_v23 = vpop.eup %2336 }
 0x321   :  { %v280_v24 = vpop.xlane.xlu1 %279  ;;  %v283_v25 = vmul.f32 %v2337_v23, %v2333_v17 }
 0x322   :  { %2338 = vrcp.f32 %v280_v24  ;;  %v2303_v24 = vld [vmem:[%s3260_s8 + $0x2] ss:$0 sm:$0xff] }
 0x323   :  { %2073 = vmatmul.msk.f32.vlgmr.msrb.gmra.mxu0 %vm262_vm10, %v283_v25 }
 0x324   :  { %588 = vmatpush.msrb.mxu0 %v2118_v26 }
 0x326   :  { %589 = vmatpush.msrb.mxu0 %v2117_v27 }
 0x328   :  { %v2339_v30 = vpop.eup %2338  ;;  %590 = vmatpush.msrb.mxu0 %v2116_v28 }
 0x329   :  { %v284_v31 = vmul.f32 %v2339_v30, %v2335_v20  ;;  %v2299_v20 = vld [vmem:[%s3255_s3 + $0x2] ss:$0 sm:$0xff] }
 0x32a   :  { %591 = vmatpush.msrb.mxu0 %v2115_v29  ;;  %v533_v21 = vadd.f32 %v2299_v20, %v532_v19  ;;  %v536_v23 = vadd.f32 %v2299_v20, %v535_v22 }
 0x32b   :  { %2074 = vmatmul.msk.f32.gmra.mxu0 %vm262_vm10, %v284_v31 }
 0x333   :  { %2097 = vmatmul.msk.f32.vlgmr.msra.gmra.mxu0 %vm222_vm8, %v347_v34 }
 0x334   :  { %746 = vmatpush.msra.mxu0 %v2137_v35 }
 0x336   :  { %747 = vmatpush.msra.mxu0 %v2136_v36 }
 0x338   :  { %748 = vmatpush.msra.mxu0 %v2135_v37 }
 0x33a   :  { %749 = vmatpush.msra.mxu0 %v2134_v39 }
 0x33b   :  { %2098 = vmatmul.msk.f32.gmra.mxu0 %vm222_vm8, %v350_v40 }
 0x343   :  { %2119 = vmatmul.msk.f32.vlgmr.msrb.gmra.mxu0 %vm63_vm0, %v2583_v63 }
 0x34b   :  { %2120 = vmatmul.msk.f32.gmra.mxu0 %vm63_vm0, %v2601_v7 }
 0x353   :  { %2139 = vmatmul.msk.f32.vlgmr.msra.gmra.mxu0 %vm63_vm0, %v2583_v63 }
 0x35b   :  { %2140 = vmatmul.msk.f32.gmra.mxu0 %vm63_vm0, %v2601_v7 }
 0x3a0   :  { %v2744_v41 = vpop.f32.mrf.mxu0 }
 0x3a1   :  { %v314_v25 = vadd.f32 %v2303_v24, %v2744_v41 }
 0x3a8   :  { %v2746_v42 = vpop.f32.mrf.mxu0 }
 0x3a9   :  { %v317_v28 = vadd.f32 %v2303_v24, %v2746_v42 }
 0x3b0   :  { %v442_v43 = vpop.f32.mrf.mxu0 }
 0x3b1   :  { %v448_v44 = vmul.f32 0.35355338, %v442_v43 }
 0x3b3   :  { %v450_v45 = vadd.f32 %v448_v44, %v2690_v56 }
 0x3b5   :  { %v452_v46 = vsel %vm262_vm10, %v450_v45, -inf }
 0x3b6   :  { %453 = vmax.xlane.f32.xlu2 %v452_v46 }
 0x3b8   :  { %v445_v47 = vpop.f32.mrf.mxu0 }
 0x3b9   :  { %v449_v48 = vmul.f32 0.35355338, %v445_v47 }
 0x3bb   :  { %v451_v49 = vadd.f32 %v449_v48, %v2694_v62 }
 0x3bd   :  { %v455_v50 = vsel %vm262_vm10, %v451_v49, -inf }
 0x3be   :  { %456 = vmax.xlane.f32.xlu0 %v455_v50 }
 0x3c0   :  { %v593_v51 = vpop.f32.mrf.mxu0 }
 0x3c8   :  { %v596_v52 = vpop.f32.mrf.mxu0 }
 0x3c9   :  { %680 = vmatpush.msrb.mxu2 %v596_v52 }
 0x3cb   :  { %681 = vmatpush.msrb.mxu2 %v593_v51 }
 0x3d0   :  { %v751_v53 = vpop.f32.mrf.mxu0 }
 0x3d1   :  { %v752_v58 = vadd.f32 %v2304_v54, %v751_v53 }
 0x3d8   :  { %v754_v55 = vpop.f32.mrf.mxu0 }
 0x3d9   :  { %v755_v57 = vadd.f32 %v2304_v54, %v754_v55 }
 0x3db   :  { %2147 = vmatpush.xpose.msk.msra.mxu2 %vm222_vm8, %v755_v57 }
 0x3df   :  { %2148 = vmatpush.xpose.msk.msra.mxu2 %vm222_vm8, %v752_v58  ;;  %v718_v58 = vpop.f32.mrf.mxu3 }
 0x429   :  { %v454_v59 = vpop.xlane.xlu2 %453 }
 0x42a   :  { %v458_v60 = vsub.f32 %v450_v45, %v454_v59  ;;  %v2302_v59 = vld [vmem:[%s3255_s3 + $0x3] ss:$0 sm:$0xff] }
 0x42c   :  { %v460_v61 = vmul.f32 1.442695, %v458_v60  ;;  %v719_v60 = vadd.f32 %v2302_v59, %v718_v58 }
 0x42e   :  { %2340 = vpow2.f32 %v460_v61  ;;  %v721_v61 = vpop.f32.mrf.mxu3 }
 0x431   :  { %v457_v0 = vpop.xlane.xlu0 %456 }
 0x432   :  { %v459_v1 = vsub.f32 %v451_v49, %v457_v0  ;;  %v722_v0 = vadd.f32 %v2302_v59, %v721_v61 }
 0x434   :  { %v2341_v2 = vpop.eup %2340  ;;  %v462_v3 = vmul.f32 1.442695, %v459_v1 }
 0x435   :  { %v464_v4 = vsel %vm262_vm10, %v2341_v2, 0.0 }
 0x436   :  { %2342 = vpow2.f32 %v462_v3  ;;  %465 = vadd.xlane.f32.xlu1 %v464_v4 }
 0x43c   :  { %v2343_v5 = vpop.eup %2342 }
 0x43d   :  { %v467_v6 = vsel %vm262_vm10, %v2343_v5, 0.0 }
 0x43e   :  { %468 = vadd.xlane.f32.xlu2 %v467_v6 }
 0x4a9   :  { %v466_v8 = vpop.xlane.xlu1 %465 }
 0x4aa   :  { %2344 = vrcp.f32 %v466_v8 }
 0x4b0   :  { %v2345_v9 = vpop.eup %2344 }
 0x4b1   :  { %v472_v11 = vmul.f32 %v2345_v9, %v2341_v2  ;;  %v469_v12 = vpop.xlane.xlu2 %468 }
 0x4b2   :  { %2346 = vrcp.f32 %v469_v12 }
 0x4b3   :  { %2099 = vmatmul.msk.f32.vlgmr.msra.gmra.mxu1 %vm262_vm10, %v472_v11 }
 0x4b4   :  { %774 = vmatpush.msra.mxu1 %v2144_v13 }
 0x4b6   :  { %775 = vmatpush.msra.mxu1 %v2143_v14 }
 0x4b8   :  { %v2347_v17 = vpop.eup %2346  ;;  %776 = vmatpush.msra.mxu1 %v2142_v15 }
 0x4b9   :  { %v473_v18 = vmul.f32 %v2347_v17, %v2343_v5 }
 0x4ba   :  { %777 = vmatpush.msra.mxu1 %v2141_v16 }
 0x4bb   :  { %2100 = vmatmul.msk.f32.gmra.mxu1 %vm262_vm10, %v473_v18 }
 0x4c3   :  { %2123 = vmatmul.msk.f32.vlgmr.msrb.gmra.mxu1 %vm222_vm8, %v533_v21 }
 0x4cb   :  { %2124 = vmatmul.msk.f32.gmra.mxu1 %vm222_vm8, %v536_v23 }
 0x4d3   :  { %2145 = vmatmul.msk.f32.vlgmr.msra.gmra.mxu1 %vm63_vm0, %v2583_v63 }
 0x4db   :  { %2146 = vmatmul.msk.f32.gmra.mxu1 %vm63_vm0, %v2601_v7 }
 0x530   :  { %v497_v26 = vpop.f32.mrf.mxu1 }
 0x531   :  { %v503_v27 = vadd.f32 %v497_v26, %v314_v25 }
 0x538   :  { %v500_v29 = vpop.f32.mrf.mxu1 }
 0x539   :  { %v504_v30 = vadd.f32 %v500_v29, %v317_v28 }
 0x540   :  { %v628_v31 = vpop.f32.mrf.mxu1 }
 0x541   :  { %v634_v32 = vmul.f32 0.35355338, %v628_v31 }
 0x543   :  { %v636_v33 = vadd.f32 %v634_v32, %v2690_v56 }
 0x545   :  { %v638_v34 = vsel %vm262_vm10, %v636_v33, -inf }
 0x546   :  { %639 = vmax.xlane.f32.xlu0 %v638_v34 }
 0x548   :  { %v631_v35 = vpop.f32.mrf.mxu1 }
 0x549   :  { %v635_v36 = vmul.f32 0.35355338, %v631_v35 }
 0x54b   :  { %v637_v37 = vadd.f32 %v635_v36, %v2694_v62 }
 0x54d   :  { %v641_v38 = vsel %vm262_vm10, %v637_v37, -inf }
 0x54e   :  { %642 = vmax.xlane.f32.xlu1 %v641_v38 }
 0x550   :  { %v779_v39 = vpop.f32.mrf.mxu1 }
 0x558   :  { %v782_v40 = vpop.f32.mrf.mxu1 }
 0x559   :  { %866 = vmatpush.msra.mxu3 %v782_v40 }
 0x55b   :  { %867 = vmatpush.msra.mxu3 %v779_v39 }
 0x5b9   :  { %v640_v41 = vpop.xlane.xlu0 %639 }
 0x5ba   :  { %v644_v42 = vsub.f32 %v636_v33, %v640_v41 }
 0x5bc   :  { %v646_v43 = vmul.f32 1.442695, %v644_v42 }
 0x5be   :  { %2348 = vpow2.f32 %v646_v43 }
 0x5c1   :  { %v643_v44 = vpop.xlane.xlu1 %642 }
 0x5c2   :  { %v645_v45 = vsub.f32 %v637_v37, %v643_v44 }
 0x5c4   :  { %v2349_v46 = vpop.eup %2348  ;;  %v648_v47 = vmul.f32 1.442695, %v645_v45 }
 0x5c5   :  { %v650_v48 = vsel %vm262_vm10, %v2349_v46, 0.0 }
 0x5c6   :  { %2350 = vpow2.f32 %v648_v47  ;;  %651 = vadd.xlane.f32.xlu2 %v650_v48  ;;  %v939_v48 = vld [vmem:[%s3257_s5 + $0x10] sm:$0xff] }
 0x5cc   :  { %v2351_v49 = vpop.eup %2350 }
 0x5cd   :  { %v653_v50 = vsel %vm262_vm10, %v2351_v49, 0.0 }
 0x5ce   :  { %654 = vadd.xlane.f32.xlu0 %v653_v50  ;;  %v937_v50 = vld [vmem:[%s3257_s5] sm:$0xff] }
 0x639   :  { %v652_v51 = vpop.xlane.xlu2 %651 }
 0x63a   :  { %2352 = vrcp.f32 %v652_v51 }
 0x640   :  { %v2353_v52 = vpop.eup %2352 }
 0x641   :  { %v658_v53 = vmul.f32 %v2353_v52, %v2349_v46  ;;  %v655_v54 = vpop.xlane.xlu0 %654 }
 0x642   :  { %2354 = vrcp.f32 %v655_v54  ;;  %v983_v54 = vld [vmem:[%s3259_s7 + $0x38] sm:$0xff] }
 0x643   :  { %2125 = vmatmul.msk.f32.vlgmr.msrb.gmra.mxu2 %vm262_vm10, %v658_v53  ;;  %1004 = vmatpush.msrb.mxu1 %v983_v54  ;;  %v2179_v54 = vld [vmem:[%s3256_s4 + $0x98] sm:$0xff] }
 0x648   :  { %v2355_v55 = vpop.eup %2354 }
 0x649   :  { %v659_v57 = vmul.f32 %v2355_v55, %v2351_v49  ;;  %v938_v49 = vld [vmem:[%s3257_s5 + $0x8] sm:$0xff]  ;;  %v982_v55 = vld [vmem:[%s3259_s7 + $0x30] sm:$0xff] }
 0x64a   :  { %1005 = vmatpush.msrb.mxu1 %v982_v55  ;;  %v2164_v55 = vld [vmem:[%s3254_s2 + $0x110] sm:$0xff] }
 0x64b   :  { %2126 = vmatmul.msk.f32.gmra.mxu2 %vm262_vm10, %v659_v57  ;;  %v981_v57 = vld [vmem:[%s3259_s7 + $0x28] sm:$0xff] }
 0x64c   :  { %1006 = vmatpush.msrb.mxu1 %v981_v57  ;;  %v2171_v57 = vld [vmem:[%s3254_s2 + $0x190] sm:$0xff] }
 0x653   :  { %2149 = vmatmul.msk.f32.vlgmr.msra.gmra.mxu2 %vm222_vm8, %v719_v60  ;;  %v980_v60 = vld [vmem:[%s3259_s7 + $0x20] sm:$0xff] }
 0x654   :  { %1007 = vmatpush.msrb.mxu1 %v980_v60  ;;  %v2170_v60 = vld [vmem:[%s3254_s2 + $0x188] sm:$0xff] }
 0x65b   :  { %2150 = vmatmul.msk.f32.gmra.mxu2 %vm222_vm8, %v722_v0 }
 0x6c6   :  { %v683_v1 = vpop.f32.mrf.mxu2 }
 0x6c7   :  { %v689_v2 = vadd.f32 %v683_v1, %v503_v27  ;;  %v979_v1 = vld [vmem:[%s3259_s7 + $0x18] sm:$0xff] }
 0x6c8   :  { %1008 = vmatpush.msrb.mxu1 %v979_v1  ;;  %v2169_v1 = vld [vmem:[%s3254_s2 + $0x180] sm:$0xff] }
 0x6ce   :  { %v686_v3 = vpop.f32.mrf.mxu2 }
 0x6cf   :  { %v690_v4 = vadd.f32 %v686_v3, %v504_v30 }
 0x6d6   :  { %v814_v5 = vpop.f32.mrf.mxu2 }
 0x6d7   :  { %v820_v6 = vmul.f32 0.35355338, %v814_v5 }
 0x6d9   :  { %v822_v8 = vadd.f32 %v820_v6, %v2690_v56 }
 0x6db   :  { %v824_v9 = vsel %vm262_vm10, %v822_v8, -inf }
 0x6dc   :  { %825 = vmax.xlane.f32.xlu1 %v824_v9 }
 0x6de   :  { %v817_v11 = vpop.f32.mrf.mxu2 }
 0x6df   :  { %v821_v12 = vmul.f32 0.35355338, %v817_v11  ;;  %v2305_v11 = vld [vmem:[%s3260_s8 + $0x3] ss:$0 sm:$0xff] }
 0x6e1   :  { %v823_v13 = vadd.f32 %v821_v12, %v2694_v62 }
 0x6e3   :  { %v827_v14 = vsel %vm262_vm10, %v823_v13, -inf }
 0x6e4   :  { %828 = vmax.xlane.f32.xlu2 %v827_v14 }
 0x74f   :  { %v826_v15 = vpop.xlane.xlu1 %825 }
 0x750   :  { %v830_v16 = vsub.f32 %v822_v8, %v826_v15  ;;  %v2306_v15 = vld [vmem:[%s3260_s8 + $0x4] ss:$0 sm:$0xff] }
 0x752   :  { %v832_v17 = vmul.f32 1.442695, %v830_v16 }
 0x754   :  { %2356 = vpow2.f32 %v832_v17 }
 0x757   :  { %v829_v18 = vpop.xlane.xlu2 %828 }
 0x758   :  { %v831_v19 = vsub.f32 %v823_v13, %v829_v18 }
 0x75a   :  { %v2357_v20 = vpop.eup %2356  ;;  %v834_v21 = vmul.f32 1.442695, %v831_v19 }
 0x75b   :  { %v836_v22 = vsel %vm262_vm10, %v2357_v20, 0.0 }
 0x75c   :  { %2358 = vpow2.f32 %v834_v21  ;;  %837 = vadd.xlane.f32.xlu0 %v836_v22 }
 0x762   :  { %v2359_v23 = vpop.eup %2358 }
 0x763   :  { %v839_v24 = vsel %vm262_vm10, %v2359_v23, 0.0 }
 0x764   :  { %840 = vadd.xlane.f32.xlu1 %v839_v24 }
 0x7cf   :  { %v838_v25 = vpop.xlane.xlu0 %837 }
 0x7d0   :  { %2360 = vrcp.f32 %v838_v25  ;;  %v978_v25 = vld [vmem:[%s3259_s7 + $0x10] sm:$0xff] }
 0x7d1   :  { %1009 = vmatpush.msrb.mxu1 %v978_v25 }
 0x7d6   :  { %v2361_v26 = vpop.eup %2360 }
 0x7d7   :  { %v844_v27 = vmul.f32 %v2361_v26, %v2357_v20  ;;  %v841_v28 = vpop.xlane.xlu1 %840  ;;  %v977_v26 = vld [vmem:[%s3259_s7 + $0x8] sm:$0xff] }
 0x7d8   :  { %2362 = vrcp.f32 %v841_v28  ;;  %1010 = vmatpush.msrb.mxu1 %v977_v26  ;;  %v2307_v28 = vld [vmem:[%s3258_s6] ss:$0 sm:$0xff] }
 0x7d9   :  { %2151 = vmatmul.msk.f32.vlgmr.msra.gmra.mxu3 %vm262_vm10, %v844_v27  ;;  %v976_v27 = vld [vmem:[%s3259_s7] sm:$0xff] }
 0x7da   :  { %1011 = vmatpush.msrb.mxu1 %v976_v27  ;;  %v2309_v27 = vld [vmem:[%s3260_s8 + $0x6] ss:$0 sm:$0xff] }
 0x7de   :  { %v2363_v29 = vpop.eup %2362 }
 0x7df   :  { %v845_v30 = vmul.f32 %v2363_v29, %v2359_v23 }
 0x7e1   :  { %2152 = vmatmul.msk.f32.gmra.mxu3 %vm262_vm10, %v845_v30 }
 0x85c   :  { %v869_v31 = vpop.f32.mrf.mxu3 }
 0x85d   :  { %v875_v32 = vadd.f32 %v869_v31, %v689_v2 }
 0x85f   :  { %v877_v33 = vadd.f32 %v875_v32, %v2583_v63 }
 0x861   :  { %v883_v34 = vsel %vm63_vm0, %v877_v33, 0.0 }
 0x862   :  { %884 = vadd.xlane.f32.xlu2 %v883_v34 }
 0x864   :  { %v872_v35 = vpop.f32.mrf.mxu3 }
 0x865   :  { %v876_v36 = vadd.f32 %v872_v35, %v690_v4  ;;  %v2308_v35 = vld [vmem:[%s3260_s8 + $0x5] ss:$0 sm:$0xff] }
 0x867   :  { %v878_v37 = vadd.f32 %v876_v36, %v2601_v7  ;;  %v940_v7 = vld [vmem:[%s3257_s5 + $0x18] sm:$0xff] }
 0x868   :  { %963 = vmatpush.msrb.mxu0 %v940_v7 }
 0x869   :  { %v886_v38 = vsel %vm63_vm0, %v878_v37, 0.0 }
 0x86a   :  { %887 = vadd.xlane.f32.xlu0 %v886_v38  ;;  %964 = vmatpush.msrb.mxu0 %v939_v48 }
 0x86c   :  { %965 = vmatpush.msrb.mxu0 %v938_v49 }
 0x86e   :  { %966 = vmatpush.msrb.mxu0 %v937_v50 }
 0x870   :  { %1168 = vmatpush.msra.mxu0 %v2179_v54 }
 0x8d5   :  { %v885_v39 = vpop.xlane.xlu2 %884 }
 0x8d6   :  { %v889_v40 = vmul.f32 %v885_v39, %v2500_v10 }
 0x8d8   :  { %v891_v41 = vsub.f32 %v877_v33, %v889_v40 }
 0x8da   :  { %v893_v42 = vmul.f32 %v891_v41, %v891_v41 }
 0x8dc   :  { %v895_v43 = vsel %vm63_vm0, %v893_v42, 0.0 }
 0x8dd   :  { %896 = vadd.xlane.f32.xlu1 %v895_v43  ;;  %v888_v44 = vpop.xlane.xlu0 %887 }
 0x8de   :  { %v890_v63 = vmul.f32 %v888_v44, %v2500_v10 }
 0x8e0   :  { %v892_v45 = vsub.f32 %v878_v37, %v890_v63 }
 0x8e2   :  { %v894_v46 = vmul.f32 %v892_v45, %v892_v45 }
 0x8e4   :  { %v898_v47 = vsel %vm63_vm0, %v894_v46, 0.0 }
 0x8e5   :  { %899 = vadd.xlane.f32.xlu2 %v898_v47 }
 0x950   :  { %v897_v51 = vpop.xlane.xlu1 %896 }
 0x951   :  { %v901_v52 = vmul.f32 %v897_v51, %v2500_v10 }
 0x953   :  { %v903_v53 = vadd.f32 1e-05, %v901_v52  ;;  %v2165_v52 = vld [vmem:[%s3254_s2 + $0x118] sm:$0xff] }
 0x954   :  { %1107 = vmatpush.msrb.mxu2 %v2165_v52 }
 0x955   :  { %2364 = vrsqrt.f32 %v903_v53  ;;  %vm911_vm13 = vweird.f32 %v903_v53 }
 0x956   :  { %1108 = vmatpush.msrb.mxu2 %v2164_v55  ;;  %v2205_v55 = vld [vmem:[%s3256_s4 + $0xb0] sm:$0xff] }
 0x958   :  { %v900_v58 = vpop.xlane.xlu2 %899 }
 0x959   :  { %v902_v59 = vmul.f32 %v900_v58, %v2500_v10  ;;  %v2178_v58 = vld [vmem:[%s3256_s4 + $0x90] sm:$0xff] }
 0x95a   :  { %1169 = vmatpush.msra.mxu0 %v2178_v58  ;;  %v2204_v58 = vld [vmem:[%s3256_s4 + $0xa8] sm:$0xff] }
 0x95b   :  { %v2365_v61 = vpop.eup %2364  ;;  %v904_v0 = vadd.f32 1e-05, %v902_v59  ;;  %v2163_v59 = vld [vmem:[%s3254_s2 + $0x108] sm:$0xff] }
 0x95c   :  { %v906_v2 = vmul.f32 %v2365_v61, %v903_v53  ;;  %vm912_vm12 = vweird.f32 %v2365_v61  ;;  %v2172_v53 = vld [vmem:[%s3254_s2 + $0x198] sm:$0xff]  ;;  %1109 = vmatpush.msrb.mxu2 %v2163_v59 }
 0x95d   :  { %2366 = vrsqrt.f32 %v904_v0  ;;  %vm913_vm14 = vmor %vm911_vm13, %vm912_vm12  ;;  %vm921_vm1 = vweird.f32 %v904_v0  ;;  %1140 = vmatpush.msrb.mxu3 %v2172_v53  ;;  %v2206_v53 = vld [vmem:[%s3256_s4 + $0xb8] sm:$0xff] }
 0x95e   :  { %v907_v3 = vmul.f32 %v2365_v61, %v906_v2  ;;  %v2176_v2 = vld [vmem:[%s3256_s4 + $0x80] sm:$0xff] }
 0x95f   :  { %1141 = vmatpush.msrb.mxu3 %v2171_v57  ;;  %v2313_v57 = vld [vmem:[%s3255_s3 + $0xd] ss:$0 sm:$0xff] }
 0x960   :  { %v908_v4 = vmul.f32 0.5, %v907_v3 }
 0x961   :  { %1142 = vmatpush.msrb.mxu3 %v2170_v60 }
 0x962   :  { %v909_v5 = vsub.f32 1.5, %v908_v4 }
 0x963   :  { %v2367_v6 = vpop.eup %2366  ;;  %1143 = vmatpush.msrb.mxu3 %v2169_v1  ;;  %v2225_v1 = vld [vmem:[%s3254_s2 + $0x1d8] sm:$0xff] }
 0x964   :  { %v910_v8 = vmul.f32 %v2365_v61, %v909_v5  ;;  %v916_v9 = vmul.f32 %v2367_v6, %v904_v0  ;;  %vm922_vm15 = vweird.f32 %v2367_v6  ;;  %v2162_v0 = vld [vmem:[%s3254_s2 + $0x100] sm:$0xff] }
 0x965   :  { %vm923_vm2 = vmor %vm921_vm1, %vm922_vm15  ;;  %1110 = vmatpush.msrb.mxu2 %v2162_v0 }
 0x966   :  { %v914_v12 = vsel %vm913_vm14, %v2365_v61, %v910_v8  ;;  %v917_v13 = vmul.f32 %v2367_v6, %v916_v9  ;;  %v2177_v61 = vld [vmem:[%s3256_s4 + $0x88] sm:$0xff]  ;;  %v2199_v8 = vld [vmem:[%s3254_s2 + $0x1b8] sm:$0xff]  ;;  %v2191_v9 = vld [vmem:[%s3254_s2 + $0x130] sm:$0xff] }
 0x967   :  { %v925_v14 = vmul.f32 %v914_v12, %v891_v41  ;;  %1170 = vmatpush.msra.mxu0 %v2177_v61  ;;  %v2203_v61 = vld [vmem:[%s3256_s4 + $0xa0] sm:$0xff] }
 0x968   :  { %v918_v16 = vmul.f32 0.5, %v917_v13  ;;  %v2190_v13 = vld [vmem:[%s3254_s2 + $0x128] sm:$0xff] }
 0x969   :  { %v930_v17 = vmul.f32 %v2305_v11, %v925_v14  ;;  %1171 = vmatpush.msra.mxu0 %v2176_v2  ;;  %v2197_v14 = vld [vmem:[%s3254_s2 + $0x1a8] sm:$0xff] }
 0x96a   :  { %v919_v18 = vsub.f32 1.5, %v918_v16  ;;  %v2189_v16 = vld [vmem:[%s3254_s2 + $0x120] sm:$0xff] }
 0x96b   :  { %v935_v19 = vadd.f32 %v2306_v15, %v930_v17  ;;  %v2196_v17 = vld [vmem:[%s3254_s2 + $0x1a0] sm:$0xff] }
 0x96c   :  { %v920_v20 = vmul.f32 %v2367_v6, %v919_v18 }
 0x96d   :  { %2155 = vmatmul.msk.f32.vlgmr.msrb.gmra.mxu0 %vm63_vm0, %v935_v19 }
 0x96e   :  { %v924_v21 = vsel %vm923_vm2, %v2367_v6, %v920_v20  ;;  %v2192_v6 = vld [vmem:[%s3254_s2 + $0x138] sm:$0xff]  ;;  %1329 = vmatpush.msrb.mxu0 %v2199_v8 }
 0x96f   :  { %v926_v22 = vmul.f32 %v924_v21, %v892_v45  ;;  %1296 = vmatpush.msra.mxu3 %v2192_v6  ;;  %v2222_v6 = vld [vmem:[%s3254_s2 + $0x1c0] sm:$0xff]  ;;  %v2244_v8 = vld [vmem:[%s3254_s2 + $0x178] sm:$0xff] }
 0x971   :  { %v931_v23 = vmul.f32 %v2305_v11, %v926_v22  ;;  %v2198_v11 = vld [vmem:[%s3254_s2 + $0x1b0] sm:$0xff]  ;;  %1297 = vmatpush.msra.mxu3 %v2191_v9 }
 0x972   :  { %1330 = vmatpush.msrb.mxu0 %v2198_v11  ;;  %v2243_v9 = vld [vmem:[%s3254_s2 + $0x170] sm:$0xff]  ;;  %v2242_v11 = vld [vmem:[%s3254_s2 + $0x168] sm:$0xff] }
 0x973   :  { %v936_v24 = vadd.f32 %v2306_v15, %v931_v23  ;;  %1298 = vmatpush.msra.mxu3 %v2190_v13 }
 0x974   :  { %1331 = vmatpush.msrb.mxu0 %v2197_v14 }
 0x975   :  { %2156 = vmatmul.msk.f32.gmra.mxu0 %vm63_vm0, %v936_v24  ;;  %1299 = vmatpush.msra.mxu3 %v2189_v16 }
 0x976   :  { %1332 = vmatpush.msrb.mxu0 %v2196_v17 }
 0x9ea   :  { %v968_v29 = vpop.f32.mrf.mxu0 }
 0x9eb   :  { %v969_v30 = vadd.f32 %v2307_v28, %v968_v29 }
 0x9ed   :  { %v974_v31 = vmax.f32 %v969_v30, 0.0  ;;  %v2310_v30 = vld [vmem:[%s3260_s8 + $0x7] ss:$0 sm:$0xff] }
 0x9ef   :  { %2158 = vmatmul.msk.f32.vlgmr.msrb.gmra.mxu1 %vm989_vm3, %v974_v31 }
 0x9f2   :  { %v971_v32 = vpop.f32.mrf.mxu0 }
 0x9f3   :  { %v972_v33 = vadd.f32 %v2307_v28, %v971_v32 }
 0x9f5   :  { %v975_v34 = vmax.f32 %v972_v33, 0.0 }
 0x9f7   :  { %2159 = vmatmul.msk.f32.gmra.mxu1 %vm989_vm3, %v975_v34 }
 0xa6c   :  { %v1013_v36 = vpop.f32.mrf.mxu1 }
 0xa6d   :  { %v1014_v37 = vadd.f32 %v2308_v35, %v1013_v36 }
 0xa6f   :  { %v1019_v38 = vadd.f32 %v1014_v37, %v935_v19  ;;  %v2218_v37 = vld [vmem:[%s3254_s2 + $0x158] sm:$0xff] }
 0xa71   :  { %v1025_v39 = vsel %vm63_vm0, %v1019_v38, 0.0 }
 0xa72   :  { %1026 = vadd.xlane.f32.xlu0 %v1025_v39  ;;  %v2217_v39 = vld [vmem:[%s3254_s2 + $0x150] sm:$0xff] }
 0xa74   :  { %v1016_v40 = vpop.f32.mrf.mxu1 }
 0xa75   :  { %v1017_v41 = vadd.f32 %v2308_v35, %v1016_v40 }
 0xa77   :  { %v1020_v42 = vadd.f32 %v1017_v41, %v936_v24  ;;  %v2216_v41 = vld [vmem:[%s3254_s2 + $0x148] sm:$0xff] }
 0xa79   :  { %v1028_v43 = vsel %vm63_vm0, %v1020_v42, 0.0 }
 0xa7a   :  { %1029 = vadd.xlane.f32.xlu1 %v1028_v43 }
 0xae5   :  { %v1027_v44 = vpop.xlane.xlu0 %1026 }
 0xae6   :  { %v1031_v63 = vmul.f32 %v1027_v44, %v2500_v10  ;;  %v2215_v44 = vld [vmem:[%s3254_s2 + $0x140] sm:$0xff] }
 0xae8   :  { %v2873_v45 = vsub.f32 %v1019_v38, %v1031_v63 }
 0xaea   :  { %v1035_v46 = vmul.f32 %v2873_v45, %v2873_v45 }
 0xaec   :  { %v1037_v47 = vsel %vm63_vm0, %v1035_v46, 0.0 }
 0xaed   :  { %v1030_v7 = vpop.xlane.xlu1 %1029  ;;  %1038 = vadd.xlane.f32.xlu2 %v1037_v47  ;;  %v2312_v47 = vld [vmem:[%s3255_s3 + $0xc] ss:$0 sm:$0xff] }
 0xaee   :  { %v1032_v48 = vmul.f32 %v1030_v7, %v2500_v10 }
 0xaf0   :  { %v2879_v49 = vsub.f32 %v1020_v42, %v1032_v48 }
 0xaf2   :  { %v1036_v50 = vmul.f32 %v2879_v49, %v2879_v49 }
 0xaf4   :  { %v1040_v51 = vsel %vm63_vm0, %v1036_v50, 0.0 }
 0xaf5   :  { %1041 = vadd.xlane.f32.xlu0 %v1040_v51  ;;  %v2311_v51 = vld [vmem:[%s3255_s3 + $0x8] ss:$0 sm:$0xff] }
 0xb60   :  { %v1039_v3 = vpop.xlane.xlu2 %1038 }
 0xb61   :  { %v1043_v4 = vmul.f32 %v1039_v3, %v2500_v10 }
 0xb63   :  { %v1045_v5 = vadd.f32 1e-05, %v1043_v4  ;;  %v2224_v4 = vld [vmem:[%s3254_s2 + $0x1d0] sm:$0xff] }
 0xb65   :  { %2368 = vrsqrt.f32 %v1045_v5  ;;  %vm1053_vm5 = vweird.f32 %v1045_v5 }
 0xb68   :  { %v1042_v12 = vpop.xlane.xlu0 %1041 }
 0xb69   :  { %v1044_v15 = vmul.f32 %v1042_v12, %v2500_v10  ;;  %v2241_v12 = vld [vmem:[%s3254_s2 + $0x160] sm:$0xff] }
 0xb6b   :  { %v2369_v18 = vpop.eup %2368  ;;  %v1046_v19 = vadd.f32 1e-05, %v1044_v15 }
 0xb6c   :  { %v1048_v20 = vmul.f32 %v2369_v18, %v1045_v5  ;;  %vm1054_vm4 = vweird.f32 %v2369_v18  ;;  %v2223_v5 = vld [vmem:[%s3254_s2 + $0x1c8] sm:$0xff] }
 0xb6d   :  { %2370 = vrsqrt.f32 %v1046_v19  ;;  %vm1055_vm6 = vmor %vm1053_vm5, %vm1054_vm4  ;;  %vm1063_vm9 = vweird.f32 %v1046_v19 }
 0xb6e   :  { %v1049_v21 = vmul.f32 %v2369_v18, %v1048_v20 }
 0xb70   :  { %v1050_v22 = vmul.f32 0.5, %v1049_v21 }
 0xb72   :  { %v1051_v23 = vsub.f32 1.5, %v1050_v22 }
 0xb73   :  { %v2371_v24 = vpop.eup %2370 }
 0xb74   :  { %v1052_v25 = vmul.f32 %v2369_v18, %v1051_v23  ;;  %v1058_v26 = vmul.f32 %v2371_v24, %v1046_v19  ;;  %vm1064_vm7 = vweird.f32 %v2371_v24 }
 0xb75   :  { %vm1065_vm11 = vmor %vm1063_vm9, %vm1064_vm7 }
 0xb76   :  { %v1056_v28 = vsel %vm1055_vm6, %v2369_v18, %v1052_v25  ;;  %v1059_v29 = vmul.f32 %v2371_v24, %v1058_v26 }
 0xb77   :  { %v1067_v31 = vmul.f32 %v1056_v28, %v2873_v45 }
 0xb78   :  { %v1060_v32 = vmul.f32 0.5, %v1059_v29 }
 0xb79   :  { %v1072_v33 = vmul.f32 %v2309_v27, %v1067_v31 }
 0xb7a   :  { %v1061_v34 = vsub.f32 1.5, %v1060_v32 }
 0xb7b   :  { %v2953_v35 = vadd.f32 %v2310_v30, %v1072_v33 }
 0xb7c   :  { %v1062_v36 = vmul.f32 %v2371_v24, %v1061_v34 }
 0xb7d   :  { %2167 = vmatmul.msk.f32.vlgmr.msrb.gmra.mxu2 %vm63_vm0, %v2953_v35  ;;  %2174 = vmatmul.msk.f32.vlgmr.msrb.gmra.mxu3 %vm63_vm0, %v2953_v35 }
 0xb7e   :  { %v1066_v38 = vsel %vm1065_vm11, %v2371_v24, %v1062_v36  ;;  %2180 = vmatmul.msk.f32.vlgmr.msra.gmra.mxu0 %vm63_vm0, %v2953_v35  ;;  %v2316_v24 = vld [vmem:[%s3255_s3 + $0xe] ss:$0 sm:$0xff] }
 0xb7f   :  { %v1068_v40 = vmul.f32 %v1066_v38, %v2879_v49  ;;  %1482 = vmatpush.msra.mxu0 %v2218_v37 }
 0xb81   :  { %v1073_v42 = vmul.f32 %v2309_v27, %v1068_v40  ;;  %1483 = vmatpush.msra.mxu0 %v2217_v39 }
 0xb83   :  { %v2971_v43 = vadd.f32 %v2310_v30, %v1073_v42  ;;  %1484 = vmatpush.msra.mxu0 %v2216_v41 }
 0xb85   :  { %2168 = vmatmul.msk.f32.gmra.mxu2 %vm63_vm0, %v2971_v43  ;;  %2175 = vmatmul.msk.f32.gmra.mxu3 %vm63_vm0, %v2971_v43 }
 0xb86   :  { %2181 = vmatmul.msk.f32.gmra.mxu0 %vm63_vm0, %v2971_v43 }
 0xb87   :  { %1485 = vmatpush.msra.mxu0 %v2215_v44  ;;  %v2232_v44 = vld [vmem:[%s3256_s4 + $0xd8] sm:$0xff] }
 0xb8d   :  { %2194 = vmatmul.msk.f32.vlgmr.msra.gmra.mxu3 %vm63_vm0, %v2953_v35 }
 0xb8e   :  { %2201 = vmatmul.msk.f32.vlgmr.msrb.gmra.mxu0 %vm63_vm0, %v2953_v35 }
 0xb95   :  { %2195 = vmatmul.msk.f32.gmra.mxu3 %vm63_vm0, %v2971_v43 }
 0xb96   :  { %2202 = vmatmul.msk.f32.gmra.mxu0 %vm63_vm0, %v2971_v43 }
 0xb9e   :  { %2220 = vmatmul.msk.f32.vlgmr.msra.gmra.mxu0 %vm63_vm0, %v2953_v35 }
 0xba6   :  { %2221 = vmatmul.msk.f32.gmra.mxu0 %vm63_vm0, %v2971_v43 }
 0xbfb   :  { %v1173_v63 = vpop.f32.mrf.mxu0 }
 0xc00   :  { %v1145_v45 = vpop.f32.mrf.mxu3  ;;  %v1112_v49 = vpop.f32.mrf.mxu2 }
 0xc01   :  { %v1146_v52 = vadd.f32 %v2312_v47, %v1145_v45  ;;  %v1113_v54 = vadd.f32 %v2311_v51, %v1112_v49  ;;  %v2230_v45 = vld [vmem:[%s3256_s4 + $0xc8] sm:$0xff] }
 0xc02   :  { %v2314_v49 = vld [vmem:[%s3255_s3 + $0x9] ss:$0 sm:$0xff] }
 0xc03   :  { %v1176_v46 = vpop.f32.mrf.mxu0 }
 0xc04   :  { %1265 = vmatpush.msra.mxu2 %v1176_v46  ;;  %v2229_v46 = vld [vmem:[%s3256_s4 + $0xc0] sm:$0xff] }
 0xc06   :  { %1266 = vmatpush.msra.mxu2 %v1173_v63  ;;  %v2231_v63 = vld [vmem:[%s3256_s4 + $0xd0] sm:$0xff] }
 0xc08   :  { %v1148_v7 = vpop.f32.mrf.mxu3  ;;  %v1115_v0 = vpop.f32.mrf.mxu2 }
 0xc09   :  { %v1149_v48 = vadd.f32 %v2312_v47, %v1148_v7  ;;  %v1116_v2 = vadd.f32 %v2311_v51, %v1115_v0  ;;  %v2251_v51 = vld [vmem:[%s3254_s2 + $0x1f8] sm:$0xff] }
 0xc0b   :  { %v1334_v50 = vpop.f32.mrf.mxu0  ;;  %2182 = vmatpush.xpose.msk.msra.mxu1 %vm222_vm8, %v1149_v48 }
 0xc0c   :  { %v1335_v3 = vadd.f32 %v2313_v57, %v1334_v50 }
 0xc0f   :  { %2183 = vmatpush.xpose.msk.msra.mxu1 %vm222_vm8, %v1146_v52  ;;  %v2250_v52 = vld [vmem:[%s3254_s2 + $0x1f0] sm:$0xff] }
 0xc10   :  { %v1301_v48 = vpop.f32.mrf.mxu3 }
 0xc11   :  { %v1302_v50 = vadd.f32 %v2314_v49, %v1301_v48 }
 0xc12   :  { %2184 = vmatmul.msk.f32.vlgmr.msra.gmra.mxu1 %vm222_vm8, %v1113_v54 }
 0xc13   :  { %1357 = vmatpush.msrb.mxu1 %v2206_v53  ;;  %v1337_v59 = vpop.f32.mrf.mxu0  ;;  %v2249_v53 = vld [vmem:[%s3254_s2 + $0x1e8] sm:$0xff] }
 0xc14   :  { %v1338_v60 = vadd.f32 %v2313_v57, %v1337_v59 }
 0xc15   :  { %1358 = vmatpush.msrb.mxu1 %v2205_v55  ;;  %v2248_v55 = vld [vmem:[%s3254_s2 + $0x1e0] sm:$0xff] }
 0xc16   :  { %2209 = vmatpush.xpose.msk.msrb.mxu2 %vm222_vm8, %v1338_v60 }
 0xc17   :  { %1359 = vmatpush.msrb.mxu1 %v2204_v58 }
 0xc18   :  { %v1304_v54 = vpop.f32.mrf.mxu3 }
 0xc19   :  { %1360 = vmatpush.msrb.mxu1 %v2203_v61  ;;  %v1305_v57 = vadd.f32 %v2314_v49, %v1304_v54 }
 0xc1a   :  { %2210 = vmatpush.xpose.msk.msrb.mxu2 %vm222_vm8, %v1335_v3  ;;  %2185 = vmatmul.msk.f32.gmra.mxu1 %vm222_vm8, %v1116_v2 }
 0xc1b   :  { %1515 = vmatpush.msra.mxu1 %v2225_v1 }
 0xc1d   :  { %1516 = vmatpush.msra.mxu1 %v2224_v4 }
 0xc1f   :  { %1517 = vmatpush.msra.mxu1 %v2223_v5 }
 0xc21   :  { %1518 = vmatpush.msra.mxu1 %v2222_v6 }
 0xc22   :  { %2207 = vmatmul.msk.f32.vlgmr.msrb.gmra.mxu1 %vm63_vm0, %v2953_v35 }
 0xc23   :  { %1668 = vmatpush.msrb.mxu1 %v2244_v8 }
 0xc25   :  { %1669 = vmatpush.msrb.mxu1 %v2243_v9 }
 0xc27   :  { %1670 = vmatpush.msrb.mxu1 %v2242_v11  ;;  %v2319_v11 = vld [vmem:[%s3255_s3 + $0xf] ss:$0 sm:$0xff] }
 0xc29   :  { %1671 = vmatpush.msrb.mxu1 %v2241_v12 }
 0xc2a   :  { %2208 = vmatmul.msk.f32.gmra.mxu1 %vm63_vm0, %v2971_v43 }
 0xc32   :  { %2227 = vmatmul.msk.f32.vlgmr.msra.gmra.mxu1 %vm63_vm0, %v2953_v35 }
 0xc3a   :  { %2228 = vmatmul.msk.f32.gmra.mxu1 %vm63_vm0, %v2971_v43 }
 0xc42   :  { %2246 = vmatmul.msk.f32.vlgmr.msrb.gmra.mxu1 %vm63_vm0, %v2953_v35 }
 0xc4a   :  { %2247 = vmatmul.msk.f32.gmra.mxu1 %vm63_vm0, %v2971_v43 }
 0xc8f   :  { %v1208_v13 = vpop.f32.mrf.mxu1 }
 0xc90   :  { %v1214_v14 = vmul.f32 0.35355338, %v1208_v13 }
 0xc92   :  { %v1216_v15 = vadd.f32 %v1214_v14, %v2690_v56 }
 0xc94   :  { %v1218_v16 = vsel %vm262_vm10, %v1216_v15, -inf }
 0xc95   :  { %1219 = vmax.xlane.f32.xlu1 %v1218_v16 }
 0xc97   :  { %v1211_v17 = vpop.f32.mrf.mxu1 }
 0xc98   :  { %v1215_v18 = vmul.f32 0.35355338, %v1211_v17 }
 0xc9a   :  { %v1217_v19 = vadd.f32 %v1215_v18, %v2694_v62 }
 0xc9c   :  { %v1221_v20 = vsel %vm262_vm10, %v1217_v19, -inf }
 0xc9d   :  { %1222 = vmax.xlane.f32.xlu2 %v1221_v20 }
 0xc9f   :  { %v1362_v21 = vpop.f32.mrf.mxu1 }
 0xca7   :  { %v1365_v22 = vpop.f32.mrf.mxu1 }
 0xca8   :  { %1449 = vmatpush.msrb.mxu3 %v1365_v22 }
 0xcaa   :  { %1450 = vmatpush.msrb.mxu3 %v1362_v21 }
 0xcaf   :  { %v1520_v23 = vpop.f32.mrf.mxu1 }
 0xcb0   :  { %v1521_v27 = vadd.f32 %v2316_v24, %v1520_v23 }
 0xcb7   :  { %v1523_v25 = vpop.f32.mrf.mxu1 }
 0xcb8   :  { %v1524_v26 = vadd.f32 %v2316_v24, %v1523_v25 }
 0xcba   :  { %2235 = vmatpush.xpose.msk.msra.mxu3 %vm222_vm8, %v1524_v26 }
 0xcbe   :  { %2236 = vmatpush.xpose.msk.msra.mxu3 %vm222_vm8, %v1521_v27 }
 0xd08   :  { %v1220_v28 = vpop.xlane.xlu1 %1219 }
 0xd09   :  { %v1224_v29 = vsub.f32 %v1216_v15, %v1220_v28 }
 0xd0b   :  { %v1226_v30 = vmul.f32 1.442695, %v1224_v29  ;;  %v2258_v29 = vld [vmem:[%s3256_s4 + $0xf8] sm:$0xff] }
 0xd0d   :  { %2372 = vpow2.f32 %v1226_v30  ;;  %v2257_v30 = vld [vmem:[%s3256_s4 + $0xf0] sm:$0xff] }
 0xd10   :  { %v1223_v31 = vpop.xlane.xlu2 %1222 }
 0xd11   :  { %v1225_v32 = vsub.f32 %v1217_v19, %v1223_v31  ;;  %v2256_v31 = vld [vmem:[%s3256_s4 + $0xe8] sm:$0xff] }
 0xd13   :  { %v2373_v33 = vpop.eup %2372  ;;  %v1228_v34 = vmul.f32 1.442695, %v1225_v32  ;;  %v2255_v32 = vld [vmem:[%s3256_s4 + $0xe0] sm:$0xff] }
 0xd14   :  { %v1230_v36 = vsel %vm262_vm10, %v2373_v33, 0.0 }
 0xd15   :  { %2374 = vpow2.f32 %v1228_v34  ;;  %1231 = vadd.xlane.f32.xlu0 %v1230_v36  ;;  %v1487_v36 = vpop.f32.mrf.mxu0 }
 0xd1b   :  { %v2375_v37 = vpop.eup %2374 }
 0xd1c   :  { %v1233_v38 = vsel %vm262_vm10, %v2375_v37, 0.0 }
 0xd1d   :  { %1234 = vadd.xlane.f32.xlu1 %v1233_v38 }
 0xd88   :  { %v1232_v39 = vpop.xlane.xlu0 %1231 }
 0xd89   :  { %2376 = vrcp.f32 %v1232_v39  ;;  %v1490_v39 = vpop.f32.mrf.mxu0 }
 0xd8f   :  { %v2377_v40 = vpop.eup %2376 }
 0xd90   :  { %v1238_v41 = vmul.f32 %v2377_v40, %v2373_v33  ;;  %v1235_v42 = vpop.xlane.xlu1 %1234 }
 0xd91   :  { %2378 = vrcp.f32 %v1235_v42 }
 0xd92   :  { %2187 = vmatmul.msk.f32.vlgmr.msra.gmra.mxu2 %vm262_vm10, %v1238_v41  ;;  %v2318_v41 = vld [vmem:[%s3260_s8 + $0x8] ss:$0 sm:$0xff] }
 0xd93   :  { %1543 = vmatpush.msra.mxu2 %v2232_v44 }
 0xd95   :  { %1544 = vmatpush.msra.mxu2 %v2231_v63 }
 0xd97   :  { %v2379_v47 = vpop.eup %2378  ;;  %1545 = vmatpush.msra.mxu2 %v2230_v45 }
 0xd98   :  { %v1239_v7 = vmul.f32 %v2379_v47, %v2375_v37  ;;  %v2315_v37 = vld [vmem:[%s3255_s3 + $0xa] ss:$0 sm:$0xff] }
 0xd99   :  { %1546 = vmatpush.msra.mxu2 %v2229_v46  ;;  %v1488_v38 = vadd.f32 %v2315_v37, %v1487_v36  ;;  %v1491_v40 = vadd.f32 %v2315_v37, %v1490_v39 }
 0xd9a   :  { %2188 = vmatmul.msk.f32.gmra.mxu2 %vm262_vm10, %v1239_v7 }
 0xda2   :  { %2211 = vmatmul.msk.f32.vlgmr.msrb.gmra.mxu2 %vm222_vm8, %v1302_v50 }
 0xda3   :  { %1701 = vmatpush.msrb.mxu2 %v2251_v51 }
 0xda5   :  { %1702 = vmatpush.msrb.mxu2 %v2250_v52 }
 0xda7   :  { %1703 = vmatpush.msrb.mxu2 %v2249_v53 }
 0xda9   :  { %1704 = vmatpush.msrb.mxu2 %v2248_v55 }
 0xdaa   :  { %2212 = vmatmul.msk.f32.gmra.mxu2 %vm222_vm8, %v1305_v57 }
 0xdb2   :  { %2233 = vmatmul.msk.f32.vlgmr.msra.gmra.mxu2 %vm63_vm0, %v2953_v35 }
 0xdba   :  { %2234 = vmatmul.msk.f32.gmra.mxu2 %vm63_vm0, %v2971_v43 }
 0xdc2   :  { %2253 = vmatmul.msk.f32.vlgmr.msrb.gmra.mxu2 %vm63_vm0, %v2953_v35 }
 0xdca   :  { %2254 = vmatmul.msk.f32.gmra.mxu2 %vm63_vm0, %v2971_v43 }
 0xe15   :  { %v3107_v58 = vpop.f32.mrf.mxu2 }
 0xe16   :  { %v1269_v42 = vadd.f32 %v2318_v41, %v3107_v58 }
 0xe1d   :  { %v3109_v59 = vpop.f32.mrf.mxu2 }
 0xe1e   :  { %v1272_v45 = vadd.f32 %v2318_v41, %v3109_v59 }
 0xe25   :  { %v1397_v60 = vpop.f32.mrf.mxu2 }
 0xe26   :  { %v1403_v61 = vmul.f32 0.35355338, %v1397_v60 }
 0xe28   :  { %v1405_v0 = vadd.f32 %v1403_v61, %v2690_v56 }
 0xe2a   :  { %v1407_v1 = vsel %vm262_vm10, %v1405_v0, -inf }
 0xe2b   :  { %1408 = vmax.xlane.f32.xlu2 %v1407_v1 }
 0xe2d   :  { %v1400_v2 = vpop.f32.mrf.mxu2 }
 0xe2e   :  { %v1404_v3 = vmul.f32 0.35355338, %v1400_v2 }
 0xe30   :  { %v1406_v4 = vadd.f32 %v1404_v3, %v2694_v62 }
 0xe32   :  { %v1410_v5 = vsel %vm262_vm10, %v1406_v4, -inf }
 0xe33   :  { %1411 = vmax.xlane.f32.xlu0 %v1410_v5 }
 0xe35   :  { %v1548_v6 = vpop.f32.mrf.mxu2 }
 0xe3d   :  { %v1551_v8 = vpop.f32.mrf.mxu2 }
 0xe3e   :  { %1635 = vmatpush.msrb.mxu0 %v1551_v8 }
 0xe40   :  { %1636 = vmatpush.msrb.mxu0 %v1548_v6 }
 0xe45   :  { %v1706_v9 = vpop.f32.mrf.mxu2 }
 0xe46   :  { %v1707_v14 = vadd.f32 %v2319_v11, %v1706_v9 }
 0xe4d   :  { %v1709_v12 = vpop.f32.mrf.mxu2 }
 0xe4e   :  { %v1710_v13 = vadd.f32 %v2319_v11, %v1709_v12 }
 0xe50   :  { %2261 = vmatpush.xpose.msk.msra.mxu0 %vm222_vm8, %v1710_v13 }
 0xe54   :  { %2262 = vmatpush.xpose.msk.msra.mxu0 %vm222_vm8, %v1707_v14  ;;  %v1673_v14 = vpop.f32.mrf.mxu1 }
 0xe9e   :  { %v1409_v15 = vpop.xlane.xlu2 %1408 }
 0xe9f   :  { %v1413_v16 = vsub.f32 %v1405_v0, %v1409_v15  ;;  %v2317_v15 = vld [vmem:[%s3255_s3 + $0xb] ss:$0 sm:$0xff] }
 0xea1   :  { %v1415_v17 = vmul.f32 1.442695, %v1413_v16  ;;  %v1674_v16 = vadd.f32 %v2317_v15, %v1673_v14  ;;  %v2280_v14 = vld [vmem:[%s3259_s7 + $0x60] sm:$0xff] }
 0xea3   :  { %2380 = vpow2.f32 %v1415_v17  ;;  %v1676_v17 = vpop.f32.mrf.mxu1 }
 0xea6   :  { %v1412_v18 = vpop.xlane.xlu0 %1411 }
 0xea7   :  { %v1414_v19 = vsub.f32 %v1406_v4, %v1412_v18  ;;  %v1677_v18 = vadd.f32 %v2317_v15, %v1676_v17  ;;  %v2279_v17 = vld [vmem:[%s3259_s7 + $0x58] sm:$0xff] }
 0xea9   :  { %v2381_v20 = vpop.eup %2380  ;;  %v1417_v21 = vmul.f32 1.442695, %v1414_v19 }
 0xeaa   :  { %v1419_v22 = vsel %vm262_vm10, %v2381_v20, 0.0 }
 0xeab   :  { %2382 = vpow2.f32 %v1417_v21  ;;  %1420 = vadd.xlane.f32.xlu1 %v1419_v22 }
 0xeb1   :  { %v2383_v23 = vpop.eup %2382 }
 0xeb2   :  { %v1422_v24 = vsel %vm262_vm10, %v2383_v23, 0.0 }
 0xeb3   :  { %1423 = vadd.xlane.f32.xlu2 %v1422_v24 }
 0xf1e   :  { %v1421_v25 = vpop.xlane.xlu1 %1420 }
 0xf1f   :  { %2384 = vrcp.f32 %v1421_v25 }
 0xf25   :  { %v2385_v26 = vpop.eup %2384 }
 0xf26   :  { %v1427_v27 = vmul.f32 %v2385_v26, %v2381_v20  ;;  %v1424_v28 = vpop.xlane.xlu2 %1423 }
 0xf27   :  { %2386 = vrcp.f32 %v1424_v28 }
 0xf28   :  { %2213 = vmatmul.msk.f32.vlgmr.msrb.gmra.mxu3 %vm262_vm10, %v1427_v27 }
 0xf29   :  { %1729 = vmatpush.msrb.mxu3 %v2258_v29 }
 0xf2b   :  { %1730 = vmatpush.msrb.mxu3 %v2257_v30 }
 0xf2d   :  { %v2387_v33 = vpop.eup %2386  ;;  %1731 = vmatpush.msrb.mxu3 %v2256_v31 }
 0xf2e   :  { %v1428_v34 = vmul.f32 %v2387_v33, %v2383_v23 }
 0xf2f   :  { %1732 = vmatpush.msrb.mxu3 %v2255_v32 }
 0xf30   :  { %2214 = vmatmul.msk.f32.gmra.mxu3 %vm262_vm10, %v1428_v34 }
 0xf38   :  { %2237 = vmatmul.msk.f32.vlgmr.msra.gmra.mxu3 %vm222_vm8, %v1488_v38 }
 0xf40   :  { %2238 = vmatmul.msk.f32.gmra.mxu3 %vm222_vm8, %v1491_v40 }
 0xf48   :  { %2259 = vmatmul.msk.f32.vlgmr.msrb.gmra.mxu3 %vm63_vm0, %v2953_v35 }
 0xf50   :  { %2260 = vmatmul.msk.f32.gmra.mxu3 %vm63_vm0, %v2971_v43 }
 0xfab   :  { %v1452_v44 = vpop.f32.mrf.mxu3 }
 0xfac   :  { %v1458_v63 = vadd.f32 %v1452_v44, %v1269_v42 }
 0xfb3   :  { %v1455_v46 = vpop.f32.mrf.mxu3 }
 0xfb4   :  { %v1459_v47 = vadd.f32 %v1455_v46, %v1272_v45 }
 0xfbb   :  { %v1583_v7 = vpop.f32.mrf.mxu3 }
 0xfbc   :  { %v1589_v48 = vmul.f32 0.35355338, %v1583_v7 }
 0xfbe   :  { %v1591_v49 = vadd.f32 %v1589_v48, %v2690_v56 }
 0xfc0   :  { %v1593_v50 = vsel %vm262_vm10, %v1591_v49, -inf }
 0xfc1   :  { %1594 = vmax.xlane.f32.xlu0 %v1593_v50 }
 0xfc3   :  { %v1586_v51 = vpop.f32.mrf.mxu3 }
 0xfc4   :  { %v1590_v52 = vmul.f32 0.35355338, %v1586_v51 }
 0xfc6   :  { %v1592_v53 = vadd.f32 %v1590_v52, %v2694_v62 }
 0xfc8   :  { %v1596_v54 = vsel %vm262_vm10, %v1592_v53, -inf }
 0xfc9   :  { %1597 = vmax.xlane.f32.xlu1 %v1596_v54 }
 0xfcb   :  { %v1734_v55 = vpop.f32.mrf.mxu3 }
 0xfd3   :  { %v1737_v57 = vpop.f32.mrf.mxu3 }
 0xfd4   :  { %1821 = vmatpush.msra.mxu1 %v1737_v57 }
 0xfd6   :  { %1822 = vmatpush.msra.mxu1 %v1734_v55 }
0x1034   :  { %v1595_v58 = vpop.xlane.xlu0 %1594 }
0x1035   :  { %v1599_v59 = vsub.f32 %v1591_v49, %v1595_v58 }
0x1037   :  { %v1601_v60 = vmul.f32 1.442695, %v1599_v59 }
0x1039   :  { %2388 = vpow2.f32 %v1601_v60 }
0x103c   :  { %v1598_v61 = vpop.xlane.xlu1 %1597 }
0x103d   :  { %v1600_v0 = vsub.f32 %v1592_v53, %v1598_v61 }
0x103f   :  { %v2389_v1 = vpop.eup %2388  ;;  %v1603_v2 = vmul.f32 1.442695, %v1600_v0 }
0x1040   :  { %v1605_v3 = vsel %vm262_vm10, %v2389_v1, 0.0 }
0x1041   :  { %2390 = vpow2.f32 %v1603_v2  ;;  %1606 = vadd.xlane.f32.xlu2 %v1605_v3  ;;  %v2270_v2 = vld [vmem:[%s3257_s5 + $0x28] sm:$0xff]  ;;  %v2269_v3 = vld [vmem:[%s3257_s5 + $0x20] sm:$0xff] }
0x1047   :  { %v2391_v4 = vpop.eup %2390 }
0x1048   :  { %v1608_v5 = vsel %vm262_vm10, %v2391_v4, 0.0 }
0x1049   :  { %1609 = vadd.xlane.f32.xlu0 %v1608_v5 }
0x10b4   :  { %v1607_v6 = vpop.xlane.xlu2 %1606 }
0x10b5   :  { %2392 = vrcp.f32 %v1607_v6 }
0x10bb   :  { %v2393_v8 = vpop.eup %2392 }
0x10bc   :  { %v1613_v9 = vmul.f32 %v2393_v8, %v2389_v1  ;;  %v1610_v11 = vpop.xlane.xlu0 %1609  ;;  %v2271_v1 = vld [vmem:[%s3257_s5 + $0x30] sm:$0xff]  ;;  %v2283_v8 = vld [vmem:[%s3259_s7 + $0x78] sm:$0xff] }
0x10bd   :  { %2394 = vrcp.f32 %v1610_v11  ;;  %1961 = vmatpush.msra.mxu3 %v2283_v8  ;;  %v2281_v11 = vld [vmem:[%s3259_s7 + $0x68] sm:$0xff] }
0x10be   :  { %2239 = vmatmul.msk.f32.vlgmr.msrb.gmra.mxu0 %vm262_vm10, %v1613_v9  ;;  %v2282_v9 = vld [vmem:[%s3259_s7 + $0x70] sm:$0xff] }
0x10bf   :  { %1962 = vmatpush.msra.mxu3 %v2282_v9 }
0x10c1   :  { %1963 = vmatpush.msra.mxu3 %v2281_v11 }
0x10c3   :  { %v2395_v12 = vpop.eup %2394  ;;  %1964 = vmatpush.msra.mxu3 %v2280_v14 }
0x10c4   :  { %v1614_v13 = vmul.f32 %v2395_v12, %v2391_v4 }
0x10c5   :  { %1965 = vmatpush.msra.mxu3 %v2279_v17 }
0x10c6   :  { %2240 = vmatmul.msk.f32.gmra.mxu0 %vm262_vm10, %v1614_v13 }
0x10ce   :  { %2263 = vmatmul.msk.f32.vlgmr.msra.gmra.mxu0 %vm222_vm8, %v1674_v16 }
0x10d6   :  { %2264 = vmatmul.msk.f32.gmra.mxu0 %vm222_vm8, %v1677_v18 }
0x113b   :  { %v1638_v19 = vpop.f32.mrf.mxu0 }
0x113c   :  { %v1644_v20 = vadd.f32 %v1638_v19, %v1458_v63 }
0x1143   :  { %v1641_v21 = vpop.f32.mrf.mxu0 }
0x1144   :  { %v1645_v22 = vadd.f32 %v1641_v21, %v1459_v47 }
0x114b   :  { %v1769_v23 = vpop.f32.mrf.mxu0 }
0x114c   :  { %v1775_v24 = vmul.f32 0.35355338, %v1769_v23 }
0x114e   :  { %v1777_v25 = vadd.f32 %v1775_v24, %v2690_v56 }
0x1150   :  { %v1779_v26 = vsel %vm262_vm10, %v1777_v25, -inf }
0x1151   :  { %1780 = vmax.xlane.f32.xlu1 %v1779_v26 }
0x1153   :  { %v1772_v27 = vpop.f32.mrf.mxu0 }
0x1154   :  { %v1776_v28 = vmul.f32 0.35355338, %v1772_v27 }
0x1156   :  { %v1778_v29 = vadd.f32 %v1776_v28, %v2694_v62 }
0x1158   :  { %v1782_v30 = vsel %vm262_vm10, %v1778_v29, -inf }
0x1159   :  { %1783 = vmax.xlane.f32.xlu2 %v1782_v30 }
0x11c4   :  { %v1781_v31 = vpop.xlane.xlu1 %1780 }
0x11c5   :  { %v1785_v32 = vsub.f32 %v1777_v25, %v1781_v31  ;;  %v2320_v25 = vld [vmem:[%s3260_s8 + $0x9] ss:$0 sm:$0xff] }
0x11c7   :  { %v1787_v33 = vmul.f32 1.442695, %v1785_v32 }
0x11c9   :  { %2396 = vpow2.f32 %v1787_v33 }
0x11cc   :  { %v1784_v34 = vpop.xlane.xlu2 %1783 }
0x11cd   :  { %v1786_v36 = vsub.f32 %v1778_v29, %v1784_v34  ;;  %v2321_v29 = vld [vmem:[%s3260_s8 + $0xa] ss:$0 sm:$0xff] }
0x11cf   :  { %v2397_v37 = vpop.eup %2396  ;;  %v1789_v38 = vmul.f32 1.442695, %v1786_v36 }
0x11d0   :  { %v1791_v56 = vsel %vm262_vm10, %v2397_v37, 0.0 }
0x11d1   :  { %2398 = vpow2.f32 %v1789_v38  ;;  %1792 = vadd.xlane.f32.xlu0 %v1791_v56 }
0x11d7   :  { %v2399_v39 = vpop.eup %2398 }
0x11d8   :  { %v1794_v40 = vsel %vm262_vm10, %v2399_v39, 0.0 }
0x11d9   :  { %1795 = vadd.xlane.f32.xlu1 %v1794_v40  ;;  %v2277_v40 = vld [vmem:[%s3259_s7 + $0x48] sm:$0xff] }
0x1244   :  { %v1793_v62 = vpop.xlane.xlu0 %1792 }
0x1245   :  { %2400 = vrcp.f32 %v1793_v62  ;;  %v2276_v62 = vld [vmem:[%s3259_s7 + $0x40] sm:$0xff] }
0x124b   :  { %v2401_v41 = vpop.eup %2400 }
0x124c   :  { %v1799_v42 = vmul.f32 %v2401_v41, %v2397_v37  ;;  %v1796_v44 = vpop.xlane.xlu1 %1795  ;;  %v2322_v41 = vld [vmem:[%s3258_s6 + $0x1] ss:$0 sm:$0xff] }
0x124d   :  { %2402 = vrcp.f32 %v1796_v44 }
0x124e   :  { %2265 = vmatmul.msk.f32.vlgmr.msra.gmra.mxu1 %vm262_vm10, %v1799_v42 }
0x1253   :  { %v2403_v63 = vpop.eup %2402 }
0x1254   :  { %v1800_v45 = vmul.f32 %v2403_v63, %v2399_v39  ;;  %v2278_v39 = vld [vmem:[%s3259_s7 + $0x50] sm:$0xff] }
0x1255   :  { %1966 = vmatpush.msra.mxu3 %v2278_v39 }
0x1256   :  { %2266 = vmatmul.msk.f32.gmra.mxu1 %vm262_vm10, %v1800_v45 }
0x1257   :  { %1967 = vmatpush.msra.mxu3 %v2277_v40 }
0x1259   :  { %1968 = vmatpush.msra.mxu3 %v2276_v62 }
0x12cb   :  { %v1824_v46 = vpop.f32.mrf.mxu1 }
0x12cc   :  { %v1830_v47 = vadd.f32 %v1824_v46, %v1644_v20 }
0x12ce   :  { %v1832_v7 = vadd.f32 %v1830_v47, %v2953_v35 }
0x12d0   :  { %v1838_v48 = vsel %vm63_vm0, %v1832_v7, 0.0 }
0x12d1   :  { %1839 = vadd.xlane.f32.xlu2 %v1838_v48 }
0x12d3   :  { %v1827_v49 = vpop.f32.mrf.mxu1 }
0x12d4   :  { %v1831_v50 = vadd.f32 %v1827_v49, %v1645_v22 }
0x12d6   :  { %v1833_v51 = vadd.f32 %v1831_v50, %v2971_v43  ;;  %v2272_v43 = vld [vmem:[%s3257_s5 + $0x38] sm:$0xff] }
0x12d7   :  { %1920 = vmatpush.msra.mxu2 %v2272_v43 }
0x12d8   :  { %v1841_v52 = vsel %vm63_vm0, %v1833_v51, 0.0 }
0x12d9   :  { %1842 = vadd.xlane.f32.xlu0 %v1841_v52  ;;  %1921 = vmatpush.msra.mxu2 %v2271_v1 }
0x12db   :  { %1922 = vmatpush.msra.mxu2 %v2270_v2 }
0x12dd   :  { %1923 = vmatpush.msra.mxu2 %v2269_v3 }
0x1344   :  { %v1840_v53 = vpop.xlane.xlu2 %1839 }
0x1345   :  { %v1844_v54 = vmul.f32 %v1840_v53, %v2500_v10 }
0x1347   :  { %v1846_v55 = vsub.f32 %v1832_v7, %v1844_v54  ;;  %v2323_v7 = vld [vmem:[%s3260_s8 + $0xb] ss:$0 sm:$0xff] }
0x1349   :  { %v1848_v57 = vmul.f32 %v1846_v55, %v1846_v55 }
0x134b   :  { %v1850_v58 = vsel %vm63_vm0, %v1848_v57, 0.0 }
0x134c   :  { %1851 = vadd.xlane.f32.xlu1 %v1850_v58  ;;  %v1843_v59 = vpop.xlane.xlu0 %1842 }
0x134d   :  { %v1845_v35 = vmul.f32 %v1843_v59, %v2500_v10 }
0x134f   :  { %v1847_v60 = vsub.f32 %v1833_v51, %v1845_v35 }
0x1351   :  { %v1849_v61 = vmul.f32 %v1847_v60, %v1847_v60 }
0x1353   :  { %v1853_v0 = vsel %vm63_vm0, %v1849_v61, 0.0 }
0x1354   :  { %1854 = vadd.xlane.f32.xlu2 %v1853_v0 }
0x13bf   :  { %v1852_v4 = vpop.xlane.xlu1 %1851 }
0x13c0   :  { %v1856_v5 = vmul.f32 %v1852_v4, %v2500_v10 }
0x13c2   :  { %v1858_v6 = vadd.f32 1e-05, %v1856_v5 }
0x13c4   :  { %2404 = vrsqrt.f32 %v1858_v6  ;;  %vm1866_vm10 = vweird.f32 %v1858_v6 }
0x13c7   :  { %v1855_v12 = vpop.xlane.xlu2 %1854 }
0x13c8   :  { %v1857_v13 = vmul.f32 %v1855_v12, %v2500_v10 }
0x13ca   :  { %v2405_v15 = vpop.eup %2404  ;;  %v1859_v16 = vadd.f32 1e-05, %v1857_v13 }
0x13cb   :  { %v1861_v18 = vmul.f32 %v2405_v15, %v1858_v6  ;;  %vm1867_vm8 = vweird.f32 %v2405_v15 }
0x13cc   :  { %2406 = vrsqrt.f32 %v1859_v16  ;;  %vm1868_vm12 = vmor %vm1866_vm10, %vm1867_vm8  ;;  %vm1876_vm14 = vweird.f32 %v1859_v16 }
0x13cd   :  { %v1862_v19 = vmul.f32 %v2405_v15, %v1861_v18 }
0x13cf   :  { %v1863_v20 = vmul.f32 0.5, %v1862_v19  ;;  %v2324_v19 = vld [vmem:[%s3260_s8 + $0xc] ss:$0 sm:$0xff] }
0x13d1   :  { %v1864_v21 = vsub.f32 1.5, %v1863_v20 }
0x13d2   :  { %v2407_v22 = vpop.eup %2406 }
0x13d3   :  { %v1865_v23 = vmul.f32 %v2405_v15, %v1864_v21  ;;  %v1871_v24 = vmul.f32 %v2407_v22, %v1859_v16  ;;  %vm1877_vm13 = vweird.f32 %v2407_v22 }
0x13d4   :  { %vm1878_vm15 = vmor %vm1876_vm14, %vm1877_vm13 }
0x13d5   :  { %v1869_v26 = vsel %vm1868_vm12, %v2405_v15, %v1865_v23  ;;  %v1872_v27 = vmul.f32 %v2407_v22, %v1871_v24 }
0x13d6   :  { %v1880_v28 = vmul.f32 %v1869_v26, %v1846_v55 }
0x13d7   :  { %v1873_v30 = vmul.f32 0.5, %v1872_v27 }
0x13d8   :  { %v1885_v31 = vmul.f32 %v2320_v25, %v1880_v28 }
0x13d9   :  { %v1874_v32 = vsub.f32 1.5, %v1873_v30 }
0x13da   :  { %v1890_v33 = vadd.f32 %v2321_v29, %v1885_v31 }
0x13db   :  { %v1875_v34 = vmul.f32 %v2407_v22, %v1874_v32 }
0x13dc   :  { %2274 = vmatmul.msk.f32.vlgmr.msra.gmra.mxu2 %vm63_vm0, %v1890_v33 }
0x13dd   :  { %v1879_v36 = vsel %vm1878_vm15, %v2407_v22, %v1875_v34  ;;  %v2325_v22 = vld [vmem:[%s3260_s8 + $0xd] ss:$0 sm:$0xff]  ;;  %s2440_s8 = smov 128  }
0x13de   :  { %v1881_v37 = vmul.f32 %v1879_v36, %v1847_v60 }
0x13e0   :  { %v1886_v38 = vmul.f32 %v2320_v25, %v1881_v37 }
0x13e2   :  { %v1891_v56 = vadd.f32 %v2321_v29, %v1886_v38 }
0x13e4   :  { %2275 = vmatmul.msk.f32.gmra.mxu2 %vm63_vm0, %v1891_v56 }
0x145f   :  { %v1925_v42 = vpop.f32.mrf.mxu2 }
0x1460   :  { %v1926_v44 = vadd.f32 %v2322_v41, %v1925_v42 }
0x1462   :  { %v1931_v63 = vmax.f32 %v1926_v44, 0.0 }
0x1464   :  { %2285 = vmatmul.msk.f32.vlgmr.msra.gmra.mxu3 %vm989_vm3, %v1931_v63 }
0x1467   :  { %v1928_v45 = vpop.f32.mrf.mxu2 }
0x1468   :  { %v1929_v46 = vadd.f32 %v2322_v41, %v1928_v45 }
0x146a   :  { %v1932_v47 = vmax.f32 %v1929_v46, 0.0 }
0x146c   :  { %2286 = vmatmul.msk.f32.gmra.mxu3 %vm989_vm3, %v1932_v47 }
0x14e7   :  { %v1970_v48 = vpop.f32.mrf.mxu3 }
0x14e8   :  { %v1971_v49 = vadd.f32 %v2323_v7, %v1970_v48 }
0x14ea   :  { %v1976_v50 = vadd.f32 %v1971_v49, %v1890_v33 }
0x14ec   :  { %v1982_v51 = vsel %vm63_vm0, %v1976_v50, 0.0 }
0x14ed   :  { %1983 = vadd.xlane.f32.xlu0 %v1982_v51 }
0x14ef   :  { %v1973_v52 = vpop.f32.mrf.mxu3 }
0x14f0   :  { %v1974_v53 = vadd.f32 %v2323_v7, %v1973_v52 }
0x14f2   :  { %v1977_v54 = vadd.f32 %v1974_v53, %v1891_v56 }
0x14f4   :  { %v1985_v55 = vsel %vm63_vm0, %v1977_v54, 0.0 }
0x14f5   :  { %1986 = vadd.xlane.f32.xlu1 %v1985_v55 }
0x1560   :  { %v1984_v57 = vpop.xlane.xlu0 %1983 }
0x1561   :  { %v1988_v58 = vmul.f32 %v1984_v57, %v2500_v10 }
0x1563   :  { %v1990_v59 = vsub.f32 %v1976_v50, %v1988_v58 }
0x1565   :  { %v1992_v35 = vmul.f32 %v1990_v59, %v1990_v59 }
0x1567   :  { %v1994_v60 = vsel %vm63_vm0, %v1992_v35, 0.0 }
0x1568   :  { %v1987_v61 = vpop.xlane.xlu1 %1986  ;;  %1995 = vadd.xlane.f32.xlu2 %v1994_v60 }
0x1569   :  { %v1989_v0 = vmul.f32 %v1987_v61, %v2500_v10 }
0x156b   :  { %v1991_v43 = vsub.f32 %v1977_v54, %v1989_v0 }
0x156d   :  { %v1993_v1 = vmul.f32 %v1991_v43, %v1991_v43 }
0x156f   :  { %v1997_v2 = vsel %vm63_vm0, %v1993_v1, 0.0 }
0x1570   :  { %1998 = vadd.xlane.f32.xlu0 %v1997_v2 }
0x15db   :  { %v1996_v3 = vpop.xlane.xlu2 %1995 }
0x15dc   :  { %v2000_v4 = vmul.f32 %v1996_v3, %v2500_v10 }
0x15de   :  { %v2002_v5 = vadd.f32 1e-05, %v2000_v4 }
0x15e0   :  { %2408 = vrsqrt.f32 %v2002_v5  ;;  %vm2010_vm2 = vweird.f32 %v2002_v5 }
0x15e3   :  { %v1999_v6 = vpop.xlane.xlu0 %1998 }
0x15e4   :  { %v2001_v8 = vmul.f32 %v1999_v6, %v2500_v10 }
0x15e6   :  { %v2409_v9 = vpop.eup %2408  ;;  %v2003_v11 = vadd.f32 1e-05, %v2001_v8 }
0x15e7   :  { %v2005_v12 = vmul.f32 %v2409_v9, %v2002_v5  ;;  %vm2011_vm1 = vweird.f32 %v2409_v9 }
0x15e8   :  { %2410 = vrsqrt.f32 %v2003_v11  ;;  %vm2012_vm3 = vmor %vm2010_vm2, %vm2011_vm1  ;;  %vm2020_vm5 = vweird.f32 %v2003_v11 }
0x15e9   :  { %v2006_v13 = vmul.f32 %v2409_v9, %v2005_v12 }
0x15eb   :  { %v2007_v14 = vmul.f32 0.5, %v2006_v13 }
0x15ed   :  { %v2008_v15 = vsub.f32 1.5, %v2007_v14 }
0x15ee   :  { %v2411_v16 = vpop.eup %2410 }
0x15ef   :  { %v2009_v17 = vmul.f32 %v2409_v9, %v2008_v15  ;;  %v2015_v18 = vmul.f32 %v2411_v16, %v2003_v11  ;;  %vm2021_vm4 = vweird.f32 %v2411_v16 }
0x15f0   :  { %vm2022_vm6 = vmor %vm2020_vm5, %vm2021_vm4 }
0x15f1   :  { %v2013_v20 = vsel %vm2012_vm3, %v2409_v9, %v2009_v17  ;;  %v2016_v21 = vmul.f32 %v2411_v16, %v2015_v18 }
0x15f2   :  { %v2024_v10 = vmul.f32 %v2013_v20, %v1990_v59 }
0x15f3   :  { %v2017_v23 = vmul.f32 0.5, %v2016_v21 }
0x15f4   :  { %v2029_v24 = vmul.f32 %v2324_v19, %v2024_v10 }
0x15f5   :  { %v2018_v25 = vsub.f32 1.5, %v2017_v23 }
0x15f6   :  { %v2034_v26 = vadd.f32 %v2325_v22, %v2029_v24 }
0x15f7   :  { %v2019_v27 = vmul.f32 %v2411_v16, %v2018_v25 }
0x15f8   :  { %2036 = vst.msk [vmem:[#allocation2] sm:$0xff] %vm63_vm0, %v2034_v26 }
0x15f9   :  { %v2023_v28 = vsel %vm2022_vm6, %v2411_v16, %v2019_v27 }
0x15fa   :  { %v2025_v29 = vmul.f32 %v2023_v28, %v1991_v43 }
0x15fc   :  { %v2030_v30 = vmul.f32 %v2324_v19, %v2025_v29 }
0x15fe   :  { %v2035_v31 = vadd.f32 %v2325_v22, %v2030_v30 }
0x1600   :  { %2037 = vst.msk [vmem:[#allocation2 + $0x8] sm:$0xff] %vm63_vm0, %v2035_v31 }
0x1601   :  { %2050 = dma.vmem_to_hbm [thread:$0]  %s2043_s14, 256, %s2045_s16, [#allocation3], %s2440_s8, %s2440_s8, %s2441_s17  }
0x1602   :  { %2436 = dma.done.wait [#allocation3], 256  }
0x1603   :  { %2437 = vsyncadd [#allocation3], 4294967040 }
0x1604   :  { %2055 = vsyncpa [#allocation3], 1 }

</bundles_post_ra>
